<compile_context>
chip_gen: v6e
topology: v6e:2x2x1
jax: 0.10.0
libtpu: 0.0.40
codegen_flags: <defaults>
</compile_context>

<pallas_src>
import functools

import jax
import jax.numpy as jnp
from jax import lax
from jax.experimental import pallas as pl
from jax.experimental.pallas import tpu as pltpu


# kh (or kw) of the 4x4 stride-2 pad-1 down-conv  ->  (input phase bit, shift)
_DOWN_TAP = ((1, -1), (0, 0), (1, 0), (0, 1))
# output-phase bit of the stride-2 ConvTranspose  ->  valid dh (or dw) shifts
_UP_SHIFTS = {0: (-1, 0), 1: (0, 1)}


# ------------------------------ Pallas kernel ------------------------------ #

def _fused_unet_kernel(qr_ref, xph_ref, w1_ref, b1_ref, w2_ref, b2_ref,
                       g_ref, beta_ref, o_ref, *, hc, wc):
    """LeakyReLU -> Conv2d(4,s2,p1) -> ReLU -> ConvT(4,s2,p1) -> BatchNorm2d.

    Pixel-lane layout: every activation is (channels, M) with
    M = N * (H/2) * (W/2) on the lane axis, lane m = (n*Hc + q)*Wc + r.

      qr_ref   : (2, M)   int32  row0 = q, row1 = r per lane
      xph_ref  : (4, C, M) f32   input phases x[:, :, a::2, b::2], idx a*2+b
      w1_ref   : (16, inner, C)   bf16  down-conv weight, tap idx kh*4+kw
      b1_ref   : (inner, 1)       f32
      w2_ref   : (16, outer, inner) bf16  ConvT weight, phase-major tap blocks
      b2_ref / g_ref / beta_ref : (outer, 1) f32
      o_ref    : (4*outer, M)     f32   rows = (ph*2+pw)*outer + co
    """
    M = xph_ref.shape[2]

    q = qr_ref[pl.ds(0, 1), :]                 # (1, M) int32
    r = qr_ref[pl.ds(1, 1), :]                 # (1, M) int32

    # Validity masks for every spatial shift (shared by both convs); masked
    # lanes are exactly the zero-padding / border-crop positions.
    masks = {}
    for dq in (-1, 0, 1):
        for dr in (-1, 0, 1):
            if (dq, dr) != (0, 0):
                masks[(dq, dr)] = ((q + dq >= 0) & (q + dq < hc) &
                                   (r + dr >= 0) & (r + dr < wc))

    def shift(src, dq, dr):
        """src[:, lane(n,q,r)] -> src[:, lane(n,q+dq,r+dr)] (0 outside), bf16."""
        delta = dq * wc + dr
        out = src if delta == 0 else pltpu.roll(src, shift=(-delta) % M, axis=1)
        if (dq, dr) != (0, 0):
            out = jnp.where(masks[(dq, dr)], out, 0.0)
        return out.astype(jnp.bfloat16)

    # ---- down path: LeakyReLU(0.2) -> 16 tap-GEMMs (in-kernel "im2col") ----
    xph = []
    for p in range(4):
        v = xph_ref[p]
        xph.append(jnp.where(v >= 0.0, v, 0.2 * v))           # LeakyReLU(0.2)

    acc1 = None
    for kh in range(4):
        a, dq = _DOWN_TAP[kh]
        for kw in range(4):
            b, dr = _DOWN_TAP[kw]
            t = jnp.dot(w1_ref[kh * 4 + kw], shift(xph[a * 2 + b], dq, dr),
                        preferred_element_type=jnp.float32)
            acc1 = t if acc1 is None else acc1 + t
    y1 = jnp.maximum(acc1 + b1_ref[...], 0.0)                 # ReLU, (inner, M)

    # ---- up path: ConvTranspose2d via 2x2 output-phase decomposition -------
    # 9 shifted copies of y1 (XLU rolls + masks), reused across the phases;
    # only the 16 non-zero (phase, shift) weight blocks are multiplied.
    ysh = {(dh, dw): shift(y1, dh, dw)
           for dh in (-1, 0, 1) for dw in (-1, 0, 1)}

    phase_out = []
    for ph in (0, 1):
        for pw in (0, 1):
            base = (ph * 2 + pw) * 4
            acc2, t = None, 0
            for dh in _UP_SHIFTS[ph]:
                for dw in _UP_SHIFTS[pw]:
                    d = jnp.dot(w2_ref[base + t], ysh[(dh, dw)],
                                preferred_element_type=jnp.float32)
                    acc2 = d if acc2 is None else acc2 + d
                    t += 1
            phase_out.append(acc2 + b2_ref[...])              # (outer, M) f32

    # ---- BatchNorm2d, training mode (biased batch var, eps = 1e-5), f32 ----
    inv_cnt = 1.0 / (4.0 * M)
    total = phase_out[0] + phase_out[1] + phase_out[2] + phase_out[3]
    mean = jnp.sum(total, axis=1, keepdims=True) * inv_cnt    # (outer, 1)
    cen = [p - mean for p in phase_out]
    ssq = cen[0] * cen[0] + cen[1] * cen[1] + cen[2] * cen[2] + cen[3] * cen[3]
    var = jnp.sum(ssq, axis=1, keepdims=True) * inv_cnt       # biased var
    scale = g_ref[...] * lax.rsqrt(var + 1e-5)                # (outer, 1)
    o_ref[...] = jnp.concatenate(
        [scale * c + beta_ref[...] for c in cen], axis=0)     # (4*outer, M)


def _full_spec(shape):
    # whole array as a single block (block_shape == full dims -> always legal)
    n = len(shape)
    return pl.BlockSpec(tuple(shape), lambda i, _n=n: (0,) * _n)


# --------------------------------- forward --------------------------------- #

@jax.jit
def unet_innermost_forward(x, params):
    """forward of UnetSkipConnectionBlock(outer_nc, inner_nc, innermost=True)."""
    w_down, b_down, w_up, b_up, gamma, beta = params
    N, C, H, W = x.shape                         # C == outer_nc
    inner = w_down.shape[0]
    outer = C
    Hc, Wc = H // 2, W // 2
    M = N * Hc * Wc                              # pixel (lane) axis
    R = 4 * outer                                # (phase, channel) rows

    # lane -> (q, r) coordinate table (tiny, O(M); keeps the in-kernel mask
    # construction to plain vector compares, no vector int div/mod)
    m_idx = jnp.arange(M, dtype=jnp.int32)
    qr = jnp.stack([(m_idx // Wc) % Hc, m_idx % Wc], axis=0)  # (2, M) int32

    # input phases in pixel-lane layout (a pure relayout of x, not 4x im2col)
    xph = jnp.stack(
        [x[:, :, a::2, b::2].transpose(1, 0, 2, 3).reshape(C, M)
         for a in (0, 1) for b in (0, 1)], axis=0)            # (4, C, M) f32

    # down-conv weight per (kh, kw) tap, bf16 MXU operand
    w1t = w_down.transpose(2, 3, 0, 1).reshape(16, inner, C).astype(jnp.bfloat16)
    b1 = b_down.reshape(inner, 1).astype(jnp.float32)

    # ConvTranspose weight, phase-decomposed; block order matches the kernel
    blocks = []
    for ph in (0, 1):
        for pw in (0, 1):
            for dh in _UP_SHIFTS[ph]:
                for dw in _UP_SHIFTS[pw]:
                    kh = ph + 1 - 2 * dh
                    kw = pw + 1 - 2 * dw
                    blocks.append(w_up[:, :, kh, kw].T)        # (outer, inner)
    w2t = jnp.stack(blocks, axis=0).astype(jnp.bfloat16)       # (16, outer, inner)

    b2 = b_up.reshape(outer, 1).astype(jnp.float32)
    g = gamma.reshape(outer, 1).astype(jnp.float32)
    bt = beta.reshape(outer, 1).astype(jnp.float32)

    args = (qr, xph, w1t, b1, w2t, b2, g, bt)

    flops = (16 * 2 * inner * C * M                 # down-conv tap GEMMs
             + 16 * 2 * outer * inner * M           # ConvTranspose tap GEMMs
             + (10 * C + 14 * inner + 24 * outer) * M)   # rolls/masks/BN
    bytes_accessed = (sum(int(a.size) * a.dtype.itemsize for a in args)
                      + 4 * R * M)

    kernel = functools.partial(_fused_unet_kernel, hc=Hc, wc=Wc)
    y = pl.pallas_call(
        kernel,
        grid=(1,),
        in_specs=[_full_spec(a.shape) for a in args],
        out_specs=_full_spec((R, M)),
        out_shape=jax.ShapeDtypeStruct((R, M), jnp.float32),
        compiler_params=pltpu.CompilerParams(
            dimension_semantics=("arbitrary",)),
        cost_estimate=pl.CostEstimate(flops=int(flops),
                                      transcendentals=int(outer),
                                      bytes_accessed=int(bytes_accessed)),
    )(*args)

    # de-phase (ph, pw, co, n, q, r) -> NCHW, then the skip concat with x
    y = y.reshape(2, 2, outer, N, Hc, Wc).transpose(3, 2, 4, 0, 5, 1)
    y = y.reshape(N, outer, H, W)
    return jnp.concatenate([y, x], axis=1)

    # TODO(synk): outermost / middle variants need a `submodule` callable (and
    # a Tanh head for outermost); only the self-contained innermost block is
    # implemented here.


# ------------------------- pure-JAX reference check ------------------------ #

def _reference_forward(x, params):
    w_down, b_down, w_up, b_up, gamma, beta = params
    dn = ("NCHW", "OIHW", "NCHW")
    h = jnp.where(x >= 0.0, x, 0.2 * x)
    h = lax.conv_general_dilated(h, w_down, (2, 2), ((1, 1), (1, 1)),
                                 dimension_numbers=dn) + b_down[None, :, None, None]
    h = jnp.maximum(h, 0.0)
    w_conv = jnp.flip(w_up, axis=(2, 3)).transpose(1, 0, 2, 3)
    h = lax.conv_general_dilated(h, w_conv, (1, 1), ((2, 2), (2, 2)),
                                 lhs_dilation=(2, 2),
                                 dimension_numbers=dn) + b_up[None, :, None, None]
    mean = jnp.mean(h, axis=(0, 2, 3), keepdims=True)
    var = jnp.mean(jnp.square(h - mean), axis=(0, 2, 3), keepdims=True)
    h = gamma[None, :, None, None] * (h - mean) * lax.rsqrt(var + 1e-5) \
        + beta[None, :, None, None]
    return jnp.concatenate([h, x], axis=1)


# ---------------------------------- main ----------------------------------- #

if __name__ == "__main__":
    outer_nc, inner_nc = 4, 8
    N, H, W = 2, 16, 16

    key = jax.random.PRNGKey(0)
    k0, k1, k2, k3, k4, k5, kx = jax.random.split(key, 7)

    # deterministic synthetic parameters (shapes follow the nn.Module __init__)
    w_down = 0.1 * jax.random.normal(k0, (inner_nc, outer_nc, 4, 4), jnp.float32)
    b_down = 0.1 * jax.random.normal(k1, (inner_nc,), jnp.float32)
    w_up = 0.1 * jax.random.normal(k2, (inner_nc, outer_nc, 4, 4), jnp.float32)
    b_up = 0.1 * jax.random.normal(k3, (outer_nc,), jnp.float32)
    gamma = 1.0 + 0.1 * jax.random.normal(k4, (outer_nc,), jnp.float32)
    beta = 0.1 * jax.random.normal(k5, (outer_nc,), jnp.float32)
    params = (w_down, b_down, w_up, b_up, gamma, beta)

    x = jax.random.normal(kx, (N, outer_nc, H, W), jnp.float32)

    out = jax.block_until_ready(unet_innermost_forward(x, params))
    assert out.shape == (N, 2 * outer_nc, H, W), out.shape

    ref = jax.block_until_ready(_reference_forward(x, params))
    # bf16 MXU operands (f32 BN / affine) -> loosened tolerance vs f32 reference
    if not jnp.allclose(out, ref, atol=5e-2, rtol=5e-2):
        err = float(jnp.max(jnp.abs(out - ref)))
        raise AssertionError(
            f"Pallas kernel output mismatch vs JAX reference (max abs err {err})")

    print("KERNEL_OK")
</pallas_src>

<mosaic_0001>
module attributes {stable_mosaic.version = 11 : i64} {
  func.func @_fused_unet_kernel(%arg0: i32, %arg1: memref<2x128xi32, #tpu.memory_space<vmem>>, %arg2: memref<4x4x128xf32, #tpu.memory_space<vmem>>, %arg3: memref<16x8x4xbf16, #tpu.memory_space<vmem>>, %arg4: memref<8x1xf32, #tpu.memory_space<vmem>>, %arg5: memref<16x4x8xbf16, #tpu.memory_space<vmem>>, %arg6: memref<4x1xf32, #tpu.memory_space<vmem>>, %arg7: memref<4x1xf32, #tpu.memory_space<vmem>>, %arg8: memref<4x1xf32, #tpu.memory_space<vmem>>, %arg9: memref<16x128xf32, #tpu.memory_space<vmem>>) attributes {dimension_semantics = [#tpu.dimension_semantics<arbitrary>], iteration_bounds = array<i64: 1>, scalar_prefetch = 0 : i64, scratch_operands = 0 : i64, tpu.core_type = #tpu.core_type<tc>, window_params = [{pipeline_mode = #tpu.pipeline_mode<synchronous>, transform_indices = @transform_0, window_bounds = array<i64: 2, 128>}, {pipeline_mode = #tpu.pipeline_mode<synchronous>, transform_indices = @transform_1, window_bounds = array<i64: 4, 4, 128>}, {pipeline_mode = #tpu.pipeline_mode<synchronous>, transform_indices = @transform_2, window_bounds = array<i64: 16, 8, 4>}, {pipeline_mode = #tpu.pipeline_mode<synchronous>, transform_indices = @transform_3, window_bounds = array<i64: 8, 1>}, {pipeline_mode = #tpu.pipeline_mode<synchronous>, transform_indices = @transform_4, window_bounds = array<i64: 16, 4, 8>}, {pipeline_mode = #tpu.pipeline_mode<synchronous>, transform_indices = @transform_5, window_bounds = array<i64: 4, 1>}, {pipeline_mode = #tpu.pipeline_mode<synchronous>, transform_indices = @transform_6, window_bounds = array<i64: 4, 1>}, {pipeline_mode = #tpu.pipeline_mode<synchronous>, transform_indices = @transform_7, window_bounds = array<i64: 4, 1>}, {pipeline_mode = #tpu.pipeline_mode<synchronous>, transform_indices = @transform_8, window_bounds = array<i64: 16, 128>}]} {
    %c0 = arith.constant 0 : index
    %c0_0 = arith.constant 0 : index
    %0 = vector.load %arg1[%c0, %c0_0] : memref<2x128xi32, #tpu.memory_space<vmem>>, vector<1x128xi32>
    %c1 = arith.constant 1 : index
    %c0_1 = arith.constant 0 : index
    %1 = vector.load %arg1[%c1, %c0_1] : memref<2x128xi32, #tpu.memory_space<vmem>>, vector<1x128xi32>
    %c-1_i32 = arith.constant -1 : i32
    %2 = vector.broadcast %c-1_i32 : i32 to vector<1x128xi32>
    %3 = arith.addi %0, %2 : vector<1x128xi32>
    %c0_i32 = arith.constant 0 : i32
    %4 = vector.broadcast %c0_i32 : i32 to vector<1x128xi32>
    %5 = arith.cmpi sge, %3, %4 : vector<1x128xi32>
    %c-1_i32_2 = arith.constant -1 : i32
    %6 = vector.broadcast %c-1_i32_2 : i32 to vector<1x128xi32>
    %7 = arith.addi %0, %6 : vector<1x128xi32>
    %c8_i32 = arith.constant 8 : i32
    %8 = vector.broadcast %c8_i32 : i32 to vector<1x128xi32>
    %9 = arith.cmpi slt, %7, %8 : vector<1x128xi32>
    %10 = arith.andi %5, %9 : vector<1x128xi1>
    %c-1_i32_3 = arith.constant -1 : i32
    %11 = vector.broadcast %c-1_i32_3 : i32 to vector<1x128xi32>
    %12 = arith.addi %1, %11 : vector<1x128xi32>
    %c0_i32_4 = arith.constant 0 : i32
    %13 = vector.broadcast %c0_i32_4 : i32 to vector<1x128xi32>
    %14 = arith.cmpi sge, %12, %13 : vector<1x128xi32>
    %15 = arith.andi %10, %14 : vector<1x128xi1>
    %c-1_i32_5 = arith.constant -1 : i32
    %16 = vector.broadcast %c-1_i32_5 : i32 to vector<1x128xi32>
    %17 = arith.addi %1, %16 : vector<1x128xi32>
    %c8_i32_6 = arith.constant 8 : i32
    %18 = vector.broadcast %c8_i32_6 : i32 to vector<1x128xi32>
    %19 = arith.cmpi slt, %17, %18 : vector<1x128xi32>
    %20 = arith.andi %15, %19 : vector<1x128xi1>
    %c-1_i32_7 = arith.constant -1 : i32
    %21 = vector.broadcast %c-1_i32_7 : i32 to vector<1x128xi32>
    %22 = arith.addi %0, %21 : vector<1x128xi32>
    %c0_i32_8 = arith.constant 0 : i32
    %23 = vector.broadcast %c0_i32_8 : i32 to vector<1x128xi32>
    %24 = arith.cmpi sge, %22, %23 : vector<1x128xi32>
    %c-1_i32_9 = arith.constant -1 : i32
    %25 = vector.broadcast %c-1_i32_9 : i32 to vector<1x128xi32>
    %26 = arith.addi %0, %25 : vector<1x128xi32>
    %c8_i32_10 = arith.constant 8 : i32
    %27 = vector.broadcast %c8_i32_10 : i32 to vector<1x128xi32>
    %28 = arith.cmpi slt, %26, %27 : vector<1x128xi32>
    %29 = arith.andi %24, %28 : vector<1x128xi1>
    %c0_i32_11 = arith.constant 0 : i32
    %30 = vector.broadcast %c0_i32_11 : i32 to vector<1x128xi32>
    %31 = arith.addi %1, %30 : vector<1x128xi32>
    %c0_i32_12 = arith.constant 0 : i32
    %32 = vector.broadcast %c0_i32_12 : i32 to vector<1x128xi32>
    %33 = arith.cmpi sge, %31, %32 : vector<1x128xi32>
    %34 = arith.andi %29, %33 : vector<1x128xi1>
    %c0_i32_13 = arith.constant 0 : i32
    %35 = vector.broadcast %c0_i32_13 : i32 to vector<1x128xi32>
    %36 = arith.addi %1, %35 : vector<1x128xi32>
    %c8_i32_14 = arith.constant 8 : i32
    %37 = vector.broadcast %c8_i32_14 : i32 to vector<1x128xi32>
    %38 = arith.cmpi slt, %36, %37 : vector<1x128xi32>
    %39 = arith.andi %34, %38 : vector<1x128xi1>
    %c-1_i32_15 = arith.constant -1 : i32
    %40 = vector.broadcast %c-1_i32_15 : i32 to vector<1x128xi32>
    %41 = arith.addi %0, %40 : vector<1x128xi32>
    %c0_i32_16 = arith.constant 0 : i32
    %42 = vector.broadcast %c0_i32_16 : i32 to vector<1x128xi32>
    %43 = arith.cmpi sge, %41, %42 : vector<1x128xi32>
    %c-1_i32_17 = arith.constant -1 : i32
    %44 = vector.broadcast %c-1_i32_17 : i32 to vector<1x128xi32>
    %45 = arith.addi %0, %44 : vector<1x128xi32>
    %c8_i32_18 = arith.constant 8 : i32
    %46 = vector.broadcast %c8_i32_18 : i32 to vector<1x128xi32>
    %47 = arith.cmpi slt, %45, %46 : vector<1x128xi32>
    %48 = arith.andi %43, %47 : vector<1x128xi1>
    %c1_i32 = arith.constant 1 : i32
    %49 = vector.broadcast %c1_i32 : i32 to vector<1x128xi32>
    %50 = arith.addi %1, %49 : vector<1x128xi32>
    %c0_i32_19 = arith.constant 0 : i32
    %51 = vector.broadcast %c0_i32_19 : i32 to vector<1x128xi32>
    %52 = arith.cmpi sge, %50, %51 : vector<1x128xi32>
    %53 = arith.andi %48, %52 : vector<1x128xi1>
    %c1_i32_20 = arith.constant 1 : i32
    %54 = vector.broadcast %c1_i32_20 : i32 to vector<1x128xi32>
    %55 = arith.addi %1, %54 : vector<1x128xi32>
    %c8_i32_21 = arith.constant 8 : i32
    %56 = vector.broadcast %c8_i32_21 : i32 to vector<1x128xi32>
    %57 = arith.cmpi slt, %55, %56 : vector<1x128xi32>
    %58 = arith.andi %53, %57 : vector<1x128xi1>
    %c0_i32_22 = arith.constant 0 : i32
    %59 = vector.broadcast %c0_i32_22 : i32 to vector<1x128xi32>
    %60 = arith.addi %0, %59 : vector<1x128xi32>
    %c0_i32_23 = arith.constant 0 : i32
    %61 = vector.broadcast %c0_i32_23 : i32 to vector<1x128xi32>
    %62 = arith.cmpi sge, %60, %61 : vector<1x128xi32>
    %c0_i32_24 = arith.constant 0 : i32
    %63 = vector.broadcast %c0_i32_24 : i32 to vector<1x128xi32>
    %64 = arith.addi %0, %63 : vector<1x128xi32>
    %c8_i32_25 = arith.constant 8 : i32
    %65 = vector.broadcast %c8_i32_25 : i32 to vector<1x128xi32>
    %66 = arith.cmpi slt, %64, %65 : vector<1x128xi32>
    %67 = arith.andi %62, %66 : vector<1x128xi1>
    %c-1_i32_26 = arith.constant -1 : i32
    %68 = vector.broadcast %c-1_i32_26 : i32 to vector<1x128xi32>
    %69 = arith.addi %1, %68 : vector<1x128xi32>
    %c0_i32_27 = arith.constant 0 : i32
    %70 = vector.broadcast %c0_i32_27 : i32 to vector<1x128xi32>
    %71 = arith.cmpi sge, %69, %70 : vector<1x128xi32>
    %72 = arith.andi %67, %71 : vector<1x128xi1>
    %c-1_i32_28 = arith.constant -1 : i32
    %73 = vector.broadcast %c-1_i32_28 : i32 to vector<1x128xi32>
    %74 = arith.addi %1, %73 : vector<1x128xi32>
    %c8_i32_29 = arith.constant 8 : i32
    %75 = vector.broadcast %c8_i32_29 : i32 to vector<1x128xi32>
    %76 = arith.cmpi slt, %74, %75 : vector<1x128xi32>
    %77 = arith.andi %72, %76 : vector<1x128xi1>
    %c0_i32_30 = arith.constant 0 : i32
    %78 = vector.broadcast %c0_i32_30 : i32 to vector<1x128xi32>
    %79 = arith.addi %0, %78 : vector<1x128xi32>
    %c0_i32_31 = arith.constant 0 : i32
    %80 = vector.broadcast %c0_i32_31 : i32 to vector<1x128xi32>
    %81 = arith.cmpi sge, %79, %80 : vector<1x128xi32>
    %c0_i32_32 = arith.constant 0 : i32
    %82 = vector.broadcast %c0_i32_32 : i32 to vector<1x128xi32>
    %83 = arith.addi %0, %82 : vector<1x128xi32>
    %c8_i32_33 = arith.constant 8 : i32
    %84 = vector.broadcast %c8_i32_33 : i32 to vector<1x128xi32>
    %85 = arith.cmpi slt, %83, %84 : vector<1x128xi32>
    %86 = arith.andi %81, %85 : vector<1x128xi1>
    %c1_i32_34 = arith.constant 1 : i32
    %87 = vector.broadcast %c1_i32_34 : i32 to vector<1x128xi32>
    %88 = arith.addi %1, %87 : vector<1x128xi32>
    %c0_i32_35 = arith.constant 0 : i32
    %89 = vector.broadcast %c0_i32_35 : i32 to vector<1x128xi32>
    %90 = arith.cmpi sge, %88, %89 : vector<1x128xi32>
    %91 = arith.andi %86, %90 : vector<1x128xi1>
    %c1_i32_36 = arith.constant 1 : i32
    %92 = vector.broadcast %c1_i32_36 : i32 to vector<1x128xi32>
    %93 = arith.addi %1, %92 : vector<1x128xi32>
    %c8_i32_37 = arith.constant 8 : i32
    %94 = vector.broadcast %c8_i32_37 : i32 to vector<1x128xi32>
    %95 = arith.cmpi slt, %93, %94 : vector<1x128xi32>
    %96 = arith.andi %91, %95 : vector<1x128xi1>
    %c1_i32_38 = arith.constant 1 : i32
    %97 = vector.broadcast %c1_i32_38 : i32 to vector<1x128xi32>
    %98 = arith.addi %0, %97 : vector<1x128xi32>
    %c0_i32_39 = arith.constant 0 : i32
    %99 = vector.broadcast %c0_i32_39 : i32 to vector<1x128xi32>
    %100 = arith.cmpi sge, %98, %99 : vector<1x128xi32>
    %c1_i32_40 = arith.constant 1 : i32
    %101 = vector.broadcast %c1_i32_40 : i32 to vector<1x128xi32>
    %102 = arith.addi %0, %101 : vector<1x128xi32>
    %c8_i32_41 = arith.constant 8 : i32
    %103 = vector.broadcast %c8_i32_41 : i32 to vector<1x128xi32>
    %104 = arith.cmpi slt, %102, %103 : vector<1x128xi32>
    %105 = arith.andi %100, %104 : vector<1x128xi1>
    %c-1_i32_42 = arith.constant -1 : i32
    %106 = vector.broadcast %c-1_i32_42 : i32 to vector<1x128xi32>
    %107 = arith.addi %1, %106 : vector<1x128xi32>
    %c0_i32_43 = arith.constant 0 : i32
    %108 = vector.broadcast %c0_i32_43 : i32 to vector<1x128xi32>
    %109 = arith.cmpi sge, %107, %108 : vector<1x128xi32>
    %110 = arith.andi %105, %109 : vector<1x128xi1>
    %c-1_i32_44 = arith.constant -1 : i32
    %111 = vector.broadcast %c-1_i32_44 : i32 to vector<1x128xi32>
    %112 = arith.addi %1, %111 : vector<1x128xi32>
    %c8_i32_45 = arith.constant 8 : i32
    %113 = vector.broadcast %c8_i32_45 : i32 to vector<1x128xi32>
    %114 = arith.cmpi slt, %112, %113 : vector<1x128xi32>
    %115 = arith.andi %110, %114 : vector<1x128xi1>
    %c1_i32_46 = arith.constant 1 : i32
    %116 = vector.broadcast %c1_i32_46 : i32 to vector<1x128xi32>
    %117 = arith.addi %0, %116 : vector<1x128xi32>
    %c0_i32_47 = arith.constant 0 : i32
    %118 = vector.broadcast %c0_i32_47 : i32 to vector<1x128xi32>
    %119 = arith.cmpi sge, %117, %118 : vector<1x128xi32>
    %c1_i32_48 = arith.constant 1 : i32
    %120 = vector.broadcast %c1_i32_48 : i32 to vector<1x128xi32>
    %121 = arith.addi %0, %120 : vector<1x128xi32>
    %c8_i32_49 = arith.constant 8 : i32
    %122 = vector.broadcast %c8_i32_49 : i32 to vector<1x128xi32>
    %123 = arith.cmpi slt, %121, %122 : vector<1x128xi32>
    %124 = arith.andi %119, %123 : vector<1x128xi1>
    %c0_i32_50 = arith.constant 0 : i32
    %125 = vector.broadcast %c0_i32_50 : i32 to vector<1x128xi32>
    %126 = arith.addi %1, %125 : vector<1x128xi32>
    %c0_i32_51 = arith.constant 0 : i32
    %127 = vector.broadcast %c0_i32_51 : i32 to vector<1x128xi32>
    %128 = arith.cmpi sge, %126, %127 : vector<1x128xi32>
    %129 = arith.andi %124, %128 : vector<1x128xi1>
    %c0_i32_52 = arith.constant 0 : i32
    %130 = vector.broadcast %c0_i32_52 : i32 to vector<1x128xi32>
    %131 = arith.addi %1, %130 : vector<1x128xi32>
    %c8_i32_53 = arith.constant 8 : i32
    %132 = vector.broadcast %c8_i32_53 : i32 to vector<1x128xi32>
    %133 = arith.cmpi slt, %131, %132 : vector<1x128xi32>
    %134 = arith.andi %129, %133 : vector<1x128xi1>
    %c1_i32_54 = arith.constant 1 : i32
    %135 = vector.broadcast %c1_i32_54 : i32 to vector<1x128xi32>
    %136 = arith.addi %0, %135 : vector<1x128xi32>
    %c0_i32_55 = arith.constant 0 : i32
    %137 = vector.broadcast %c0_i32_55 : i32 to vector<1x128xi32>
    %138 = arith.cmpi sge, %136, %137 : vector<1x128xi32>
    %c1_i32_56 = arith.constant 1 : i32
    %139 = vector.broadcast %c1_i32_56 : i32 to vector<1x128xi32>
    %140 = arith.addi %0, %139 : vector<1x128xi32>
    %c8_i32_57 = arith.constant 8 : i32
    %141 = vector.broadcast %c8_i32_57 : i32 to vector<1x128xi32>
    %142 = arith.cmpi slt, %140, %141 : vector<1x128xi32>
    %143 = arith.andi %138, %142 : vector<1x128xi1>
    %c1_i32_58 = arith.constant 1 : i32
    %144 = vector.broadcast %c1_i32_58 : i32 to vector<1x128xi32>
    %145 = arith.addi %1, %144 : vector<1x128xi32>
    %c0_i32_59 = arith.constant 0 : i32
    %146 = vector.broadcast %c0_i32_59 : i32 to vector<1x128xi32>
    %147 = arith.cmpi sge, %145, %146 : vector<1x128xi32>
    %148 = arith.andi %143, %147 : vector<1x128xi1>
    %c1_i32_60 = arith.constant 1 : i32
    %149 = vector.broadcast %c1_i32_60 : i32 to vector<1x128xi32>
    %150 = arith.addi %1, %149 : vector<1x128xi32>
    %c8_i32_61 = arith.constant 8 : i32
    %151 = vector.broadcast %c8_i32_61 : i32 to vector<1x128xi32>
    %152 = arith.cmpi slt, %150, %151 : vector<1x128xi32>
    %153 = arith.andi %148, %152 : vector<1x128xi1>
    %c0_62 = arith.constant 0 : index
    %c0_63 = arith.constant 0 : index
    %c0_64 = arith.constant 0 : index
    %154 = vector.load %arg2[%c0_62, %c0_63, %c0_64] : memref<4x4x128xf32, #tpu.memory_space<vmem>>, vector<1x4x128xf32>
    %155 = vector.shape_cast %154 : vector<1x4x128xf32> to vector<4x128xf32>
    %cst = arith.constant 0.000000e+00 : f32
    %156 = vector.broadcast %cst : f32 to vector<4x128xf32>
    %157 = arith.cmpf oge, %155, %156 : vector<4x128xf32>
    %cst_65 = arith.constant 2.000000e-01 : f32
    %158 = vector.broadcast %cst_65 : f32 to vector<4x128xf32>
    %159 = arith.mulf %158, %155 : vector<4x128xf32>
    %160 = arith.select %157, %155, %159 : vector<4x128xi1>, vector<4x128xf32>
    %c1_66 = arith.constant 1 : index
    %c0_67 = arith.constant 0 : index
    %c0_68 = arith.constant 0 : index
    %161 = vector.load %arg2[%c1_66, %c0_67, %c0_68] : memref<4x4x128xf32, #tpu.memory_space<vmem>>, vector<1x4x128xf32>
    %162 = vector.shape_cast %161 : vector<1x4x128xf32> to vector<4x128xf32>
    %cst_69 = arith.constant 0.000000e+00 : f32
    %163 = vector.broadcast %cst_69 : f32 to vector<4x128xf32>
    %164 = arith.cmpf oge, %162, %163 : vector<4x128xf32>
    %cst_70 = arith.constant 2.000000e-01 : f32
    %165 = vector.broadcast %cst_70 : f32 to vector<4x128xf32>
    %166 = arith.mulf %165, %162 : vector<4x128xf32>
    %167 = arith.select %164, %162, %166 : vector<4x128xi1>, vector<4x128xf32>
    %c2 = arith.constant 2 : index
    %c0_71 = arith.constant 0 : index
    %c0_72 = arith.constant 0 : index
    %168 = vector.load %arg2[%c2, %c0_71, %c0_72] : memref<4x4x128xf32, #tpu.memory_space<vmem>>, vector<1x4x128xf32>
    %169 = vector.shape_cast %168 : vector<1x4x128xf32> to vector<4x128xf32>
    %cst_73 = arith.constant 0.000000e+00 : f32
    %170 = vector.broadcast %cst_73 : f32 to vector<4x128xf32>
    %171 = arith.cmpf oge, %169, %170 : vector<4x128xf32>
    %cst_74 = arith.constant 2.000000e-01 : f32
    %172 = vector.broadcast %cst_74 : f32 to vector<4x128xf32>
    %173 = arith.mulf %172, %169 : vector<4x128xf32>
    %174 = arith.select %171, %169, %173 : vector<4x128xi1>, vector<4x128xf32>
    %c3 = arith.constant 3 : index
    %c0_75 = arith.constant 0 : index
    %c0_76 = arith.constant 0 : index
    %175 = vector.load %arg2[%c3, %c0_75, %c0_76] : memref<4x4x128xf32, #tpu.memory_space<vmem>>, vector<1x4x128xf32>
    %176 = vector.shape_cast %175 : vector<1x4x128xf32> to vector<4x128xf32>
    %cst_77 = arith.constant 0.000000e+00 : f32
    %177 = vector.broadcast %cst_77 : f32 to vector<4x128xf32>
    %178 = arith.cmpf oge, %176, %177 : vector<4x128xf32>
    %cst_78 = arith.constant 2.000000e-01 : f32
    %179 = vector.broadcast %cst_78 : f32 to vector<4x128xf32>
    %180 = arith.mulf %179, %176 : vector<4x128xf32>
    %181 = arith.select %178, %176, %180 : vector<4x128xi1>, vector<4x128xf32>
    %c0_79 = arith.constant 0 : index
    %c0_80 = arith.constant 0 : index
    %c0_81 = arith.constant 0 : index
    %182 = vector.load %arg3[%c0_79, %c0_80, %c0_81] : memref<16x8x4xbf16, #tpu.memory_space<vmem>>, vector<1x8x4xbf16>
    %183 = vector.shape_cast %182 : vector<1x8x4xbf16> to vector<8x4xbf16>
    %c9_i32 = arith.constant 9 : i32
    %184 = tpu.dynamic_rotate %181 by %c9_i32 dim 1 : vector<4x128xf32>, i32 -> vector<4x128xf32>
    %cst_82 = arith.constant 0.000000e+00 : f32
    %185 = vector.shape_cast %20 : vector<1x128xi1> to vector<1x128xi1>
    %186 = vector.broadcast %185 : vector<1x128xi1> to vector<4x128xi1>
    %187 = vector.broadcast %cst_82 : f32 to vector<4x128xf32>
    %188 = arith.select %186, %184, %187 : vector<4x128xi1>, vector<4x128xf32>
    %189 = arith.truncf %188 : vector<4x128xf32> to vector<4x128xbf16>
    %cst_83 = arith.constant dense<0.000000e+00> : vector<8x128xf32>
    %190 = tpu.matmul %183, %189, %cst_83 {dimension_numbers = #tpu.dot_dimension_numbers<[1], [0], [0], [1], [0, 0, 1, 1], [], []>} : vector<8x4xbf16>, vector<4x128xbf16>, vector<8x128xf32> -> vector<8x128xf32>
    %c1_84 = arith.constant 1 : index
    %c0_85 = arith.constant 0 : index
    %c0_86 = arith.constant 0 : index
    %191 = vector.load %arg3[%c1_84, %c0_85, %c0_86] : memref<16x8x4xbf16, #tpu.memory_space<vmem>>, vector<1x8x4xbf16>
    %192 = vector.shape_cast %191 : vector<1x8x4xbf16> to vector<8x4xbf16>
    %c8_i32_87 = arith.constant 8 : i32
    %193 = tpu.dynamic_rotate %174 by %c8_i32_87 dim 1 : vector<4x128xf32>, i32 -> vector<4x128xf32>
    %cst_88 = arith.constant 0.000000e+00 : f32
    %194 = vector.shape_cast %39 : vector<1x128xi1> to vector<1x128xi1>
    %195 = vector.broadcast %194 : vector<1x128xi1> to vector<4x128xi1>
    %196 = vector.broadcast %cst_88 : f32 to vector<4x128xf32>
    %197 = arith.select %195, %193, %196 : vector<4x128xi1>, vector<4x128xf32>
    %198 = arith.truncf %197 : vector<4x128xf32> to vector<4x128xbf16>
    %cst_89 = arith.constant dense<0.000000e+00> : vector<8x128xf32>
    %199 = tpu.matmul %192, %198, %cst_89 {dimension_numbers = #tpu.dot_dimension_numbers<[1], [0], [0], [1], [0, 0, 1, 1], [], []>} : vector<8x4xbf16>, vector<4x128xbf16>, vector<8x128xf32> -> vector<8x128xf32>
    %200 = arith.addf %190, %199 : vector<8x128xf32>
    %c2_90 = arith.constant 2 : index
    %c0_91 = arith.constant 0 : index
    %c0_92 = arith.constant 0 : index
    %201 = vector.load %arg3[%c2_90, %c0_91, %c0_92] : memref<16x8x4xbf16, #tpu.memory_space<vmem>>, vector<1x8x4xbf16>
    %202 = vector.shape_cast %201 : vector<1x8x4xbf16> to vector<8x4xbf16>
    %c8_i32_93 = arith.constant 8 : i32
    %203 = tpu.dynamic_rotate %181 by %c8_i32_93 dim 1 : vector<4x128xf32>, i32 -> vector<4x128xf32>
    %cst_94 = arith.constant 0.000000e+00 : f32
    %204 = vector.shape_cast %39 : vector<1x128xi1> to vector<1x128xi1>
    %205 = vector.broadcast %204 : vector<1x128xi1> to vector<4x128xi1>
    %206 = vector.broadcast %cst_94 : f32 to vector<4x128xf32>
    %207 = arith.select %205, %203, %206 : vector<4x128xi1>, vector<4x128xf32>
    %208 = arith.truncf %207 : vector<4x128xf32> to vector<4x128xbf16>
    %cst_95 = arith.constant dense<0.000000e+00> : vector<8x128xf32>
    %209 = tpu.matmul %202, %208, %cst_95 {dimension_numbers = #tpu.dot_dimension_numbers<[1], [0], [0], [1], [0, 0, 1, 1], [], []>} : vector<8x4xbf16>, vector<4x128xbf16>, vector<8x128xf32> -> vector<8x128xf32>
    %210 = arith.addf %200, %209 : vector<8x128xf32>
    %c3_96 = arith.constant 3 : index
    %c0_97 = arith.constant 0 : index
    %c0_98 = arith.constant 0 : index
    %211 = vector.load %arg3[%c3_96, %c0_97, %c0_98] : memref<16x8x4xbf16, #tpu.memory_space<vmem>>, vector<1x8x4xbf16>
    %212 = vector.shape_cast %211 : vector<1x8x4xbf16> to vector<8x4xbf16>
    %c7_i32 = arith.constant 7 : i32
    %213 = tpu.dynamic_rotate %174 by %c7_i32 dim 1 : vector<4x128xf32>, i32 -> vector<4x128xf32>
    %cst_99 = arith.constant 0.000000e+00 : f32
    %214 = vector.shape_cast %58 : vector<1x128xi1> to vector<1x128xi1>
    %215 = vector.broadcast %214 : vector<1x128xi1> to vector<4x128xi1>
    %216 = vector.broadcast %cst_99 : f32 to vector<4x128xf32>
    %217 = arith.select %215, %213, %216 : vector<4x128xi1>, vector<4x128xf32>
    %218 = arith.truncf %217 : vector<4x128xf32> to vector<4x128xbf16>
    %cst_100 = arith.constant dense<0.000000e+00> : vector<8x128xf32>
    %219 = tpu.matmul %212, %218, %cst_100 {dimension_numbers = #tpu.dot_dimension_numbers<[1], [0], [0], [1], [0, 0, 1, 1], [], []>} : vector<8x4xbf16>, vector<4x128xbf16>, vector<8x128xf32> -> vector<8x128xf32>
    %220 = arith.addf %210, %219 : vector<8x128xf32>
    %c4 = arith.constant 4 : index
    %c0_101 = arith.constant 0 : index
    %c0_102 = arith.constant 0 : index
    %221 = vector.load %arg3[%c4, %c0_101, %c0_102] : memref<16x8x4xbf16, #tpu.memory_space<vmem>>, vector<1x8x4xbf16>
    %222 = vector.shape_cast %221 : vector<1x8x4xbf16> to vector<8x4xbf16>
    %c1_i32_103 = arith.constant 1 : i32
    %223 = tpu.dynamic_rotate %167 by %c1_i32_103 dim 1 : vector<4x128xf32>, i32 -> vector<4x128xf32>
    %cst_104 = arith.constant 0.000000e+00 : f32
    %224 = vector.shape_cast %77 : vector<1x128xi1> to vector<1x128xi1>
    %225 = vector.broadcast %224 : vector<1x128xi1> to vector<4x128xi1>
    %226 = vector.broadcast %cst_104 : f32 to vector<4x128xf32>
    %227 = arith.select %225, %223, %226 : vector<4x128xi1>, vector<4x128xf32>
    %228 = arith.truncf %227 : vector<4x128xf32> to vector<4x128xbf16>
    %cst_105 = arith.constant dense<0.000000e+00> : vector<8x128xf32>
    %229 = tpu.matmul %222, %228, %cst_105 {dimension_numbers = #tpu.dot_dimension_numbers<[1], [0], [0], [1], [0, 0, 1, 1], [], []>} : vector<8x4xbf16>, vector<4x128xbf16>, vector<8x128xf32> -> vector<8x128xf32>
    %230 = arith.addf %220, %229 : vector<8x128xf32>
    %c5 = arith.constant 5 : index
    %c0_106 = arith.constant 0 : index
    %c0_107 = arith.constant 0 : index
    %231 = vector.load %arg3[%c5, %c0_106, %c0_107] : memref<16x8x4xbf16, #tpu.memory_space<vmem>>, vector<1x8x4xbf16>
    %232 = vector.shape_cast %231 : vector<1x8x4xbf16> to vector<8x4xbf16>
    %233 = arith.truncf %160 : vector<4x128xf32> to vector<4x128xbf16>
    %cst_108 = arith.constant dense<0.000000e+00> : vector<8x128xf32>
    %234 = tpu.matmul %232, %233, %cst_108 {dimension_numbers = #tpu.dot_dimension_numbers<[1], [0], [0], [1], [0, 0, 1, 1], [], []>} : vector<8x4xbf16>, vector<4x128xbf16>, vector<8x128xf32> -> vector<8x128xf32>
    %235 = arith.addf %230, %234 : vector<8x128xf32>
    %c6 = arith.constant 6 : index
    %c0_109 = arith.constant 0 : index
    %c0_110 = arith.constant 0 : index
    %236 = vector.load %arg3[%c6, %c0_109, %c0_110] : memref<16x8x4xbf16, #tpu.memory_space<vmem>>, vector<1x8x4xbf16>
    %237 = vector.shape_cast %236 : vector<1x8x4xbf16> to vector<8x4xbf16>
    %238 = arith.truncf %167 : vector<4x128xf32> to vector<4x128xbf16>
    %cst_111 = arith.constant dense<0.000000e+00> : vector<8x128xf32>
    %239 = tpu.matmul %237, %238, %cst_111 {dimension_numbers = #tpu.dot_dimension_numbers<[1], [0], [0], [1], [0, 0, 1, 1], [], []>} : vector<8x4xbf16>, vector<4x128xbf16>, vector<8x128xf32> -> vector<8x128xf32>
    %240 = arith.addf %235, %239 : vector<8x128xf32>
    %c7 = arith.constant 7 : index
    %c0_112 = arith.constant 0 : index
    %c0_113 = arith.constant 0 : index
    %241 = vector.load %arg3[%c7, %c0_112, %c0_113] : memref<16x8x4xbf16, #tpu.memory_space<vmem>>, vector<1x8x4xbf16>
    %242 = vector.shape_cast %241 : vector<1x8x4xbf16> to vector<8x4xbf16>
    %c127_i32 = arith.constant 127 : i32
    %243 = tpu.dynamic_rotate %160 by %c127_i32 dim 1 : vector<4x128xf32>, i32 -> vector<4x128xf32>
    %cst_114 = arith.constant 0.000000e+00 : f32
    %244 = vector.shape_cast %96 : vector<1x128xi1> to vector<1x128xi1>
    %245 = vector.broadcast %244 : vector<1x128xi1> to vector<4x128xi1>
    %246 = vector.broadcast %cst_114 : f32 to vector<4x128xf32>
    %247 = arith.select %245, %243, %246 : vector<4x128xi1>, vector<4x128xf32>
    %248 = arith.truncf %247 : vector<4x128xf32> to vector<4x128xbf16>
    %cst_115 = arith.constant dense<0.000000e+00> : vector<8x128xf32>
    %249 = tpu.matmul %242, %248, %cst_115 {dimension_numbers = #tpu.dot_dimension_numbers<[1], [0], [0], [1], [0, 0, 1, 1], [], []>} : vector<8x4xbf16>, vector<4x128xbf16>, vector<8x128xf32> -> vector<8x128xf32>
    %250 = arith.addf %240, %249 : vector<8x128xf32>
    %c8 = arith.constant 8 : index
    %c0_116 = arith.constant 0 : index
    %c0_117 = arith.constant 0 : index
    %251 = vector.load %arg3[%c8, %c0_116, %c0_117] : memref<16x8x4xbf16, #tpu.memory_space<vmem>>, vector<1x8x4xbf16>
    %252 = vector.shape_cast %251 : vector<1x8x4xbf16> to vector<8x4xbf16>
    %c1_i32_118 = arith.constant 1 : i32
    %253 = tpu.dynamic_rotate %181 by %c1_i32_118 dim 1 : vector<4x128xf32>, i32 -> vector<4x128xf32>
    %cst_119 = arith.constant 0.000000e+00 : f32
    %254 = vector.shape_cast %77 : vector<1x128xi1> to vector<1x128xi1>
    %255 = vector.broadcast %254 : vector<1x128xi1> to vector<4x128xi1>
    %256 = vector.broadcast %cst_119 : f32 to vector<4x128xf32>
    %257 = arith.select %255, %253, %256 : vector<4x128xi1>, vector<4x128xf32>
    %258 = arith.truncf %257 : vector<4x128xf32> to vector<4x128xbf16>
    %cst_120 = arith.constant dense<0.000000e+00> : vector<8x128xf32>
    %259 = tpu.matmul %252, %258, %cst_120 {dimension_numbers = #tpu.dot_dimension_numbers<[1], [0], [0], [1], [0, 0, 1, 1], [], []>} : vector<8x4xbf16>, vector<4x128xbf16>, vector<8x128xf32> -> vector<8x128xf32>
    %260 = arith.addf %250, %259 : vector<8x128xf32>
    %c9 = arith.constant 9 : index
    %c0_121 = arith.constant 0 : index
    %c0_122 = arith.constant 0 : index
    %261 = vector.load %arg3[%c9, %c0_121, %c0_122] : memref<16x8x4xbf16, #tpu.memory_space<vmem>>, vector<1x8x4xbf16>
    %262 = vector.shape_cast %261 : vector<1x8x4xbf16> to vector<8x4xbf16>
    %263 = arith.truncf %174 : vector<4x128xf32> to vector<4x128xbf16>
    %cst_123 = arith.constant dense<0.000000e+00> : vector<8x128xf32>
    %264 = tpu.matmul %262, %263, %cst_123 {dimension_numbers = #tpu.dot_dimension_numbers<[1], [0], [0], [1], [0, 0, 1, 1], [], []>} : vector<8x4xbf16>, vector<4x128xbf16>, vector<8x128xf32> -> vector<8x128xf32>
    %265 = arith.addf %260, %264 : vector<8x128xf32>
    %c10 = arith.constant 10 : index
    %c0_124 = arith.constant 0 : index
    %c0_125 = arith.constant 0 : index
    %266 = vector.load %arg3[%c10, %c0_124, %c0_125] : memref<16x8x4xbf16, #tpu.memory_space<vmem>>, vector<1x8x4xbf16>
    %267 = vector.shape_cast %266 : vector<1x8x4xbf16> to vector<8x4xbf16>
    %268 = arith.truncf %181 : vector<4x128xf32> to vector<4x128xbf16>
    %cst_126 = arith.constant dense<0.000000e+00> : vector<8x128xf32>
    %269 = tpu.matmul %267, %268, %cst_126 {dimension_numbers = #tpu.dot_dimension_numbers<[1], [0], [0], [1], [0, 0, 1, 1], [], []>} : vector<8x4xbf16>, vector<4x128xbf16>, vector<8x128xf32> -> vector<8x128xf32>
    %270 = arith.addf %265, %269 : vector<8x128xf32>
    %c11 = arith.constant 11 : index
    %c0_127 = arith.constant 0 : index
    %c0_128 = arith.constant 0 : index
    %271 = vector.load %arg3[%c11, %c0_127, %c0_128] : memref<16x8x4xbf16, #tpu.memory_space<vmem>>, vector<1x8x4xbf16>
    %272 = vector.shape_cast %271 : vector<1x8x4xbf16> to vector<8x4xbf16>
    %c127_i32_129 = arith.constant 127 : i32
    %273 = tpu.dynamic_rotate %174 by %c127_i32_129 dim 1 : vector<4x128xf32>, i32 -> vector<4x128xf32>
    %cst_130 = arith.constant 0.000000e+00 : f32
    %274 = vector.shape_cast %96 : vector<1x128xi1> to vector<1x128xi1>
    %275 = vector.broadcast %274 : vector<1x128xi1> to vector<4x128xi1>
    %276 = vector.broadcast %cst_130 : f32 to vector<4x128xf32>
    %277 = arith.select %275, %273, %276 : vector<4x128xi1>, vector<4x128xf32>
    %278 = arith.truncf %277 : vector<4x128xf32> to vector<4x128xbf16>
    %cst_131 = arith.constant dense<0.000000e+00> : vector<8x128xf32>
    %279 = tpu.matmul %272, %278, %cst_131 {dimension_numbers = #tpu.dot_dimension_numbers<[1], [0], [0], [1], [0, 0, 1, 1], [], []>} : vector<8x4xbf16>, vector<4x128xbf16>, vector<8x128xf32> -> vector<8x128xf32>
    %280 = arith.addf %270, %279 : vector<8x128xf32>
    %c12 = arith.constant 12 : index
    %c0_132 = arith.constant 0 : index
    %c0_133 = arith.constant 0 : index
    %281 = vector.load %arg3[%c12, %c0_132, %c0_133] : memref<16x8x4xbf16, #tpu.memory_space<vmem>>, vector<1x8x4xbf16>
    %282 = vector.shape_cast %281 : vector<1x8x4xbf16> to vector<8x4xbf16>
    %c121_i32 = arith.constant 121 : i32
    %283 = tpu.dynamic_rotate %167 by %c121_i32 dim 1 : vector<4x128xf32>, i32 -> vector<4x128xf32>
    %cst_134 = arith.constant 0.000000e+00 : f32
    %284 = vector.shape_cast %115 : vector<1x128xi1> to vector<1x128xi1>
    %285 = vector.broadcast %284 : vector<1x128xi1> to vector<4x128xi1>
    %286 = vector.broadcast %cst_134 : f32 to vector<4x128xf32>
    %287 = arith.select %285, %283, %286 : vector<4x128xi1>, vector<4x128xf32>
    %288 = arith.truncf %287 : vector<4x128xf32> to vector<4x128xbf16>
    %cst_135 = arith.constant dense<0.000000e+00> : vector<8x128xf32>
    %289 = tpu.matmul %282, %288, %cst_135 {dimension_numbers = #tpu.dot_dimension_numbers<[1], [0], [0], [1], [0, 0, 1, 1], [], []>} : vector<8x4xbf16>, vector<4x128xbf16>, vector<8x128xf32> -> vector<8x128xf32>
    %290 = arith.addf %280, %289 : vector<8x128xf32>
    %c13 = arith.constant 13 : index
    %c0_136 = arith.constant 0 : index
    %c0_137 = arith.constant 0 : index
    %291 = vector.load %arg3[%c13, %c0_136, %c0_137] : memref<16x8x4xbf16, #tpu.memory_space<vmem>>, vector<1x8x4xbf16>
    %292 = vector.shape_cast %291 : vector<1x8x4xbf16> to vector<8x4xbf16>
    %c120_i32 = arith.constant 120 : i32
    %293 = tpu.dynamic_rotate %160 by %c120_i32 dim 1 : vector<4x128xf32>, i32 -> vector<4x128xf32>
    %cst_138 = arith.constant 0.000000e+00 : f32
    %294 = vector.shape_cast %134 : vector<1x128xi1> to vector<1x128xi1>
    %295 = vector.broadcast %294 : vector<1x128xi1> to vector<4x128xi1>
    %296 = vector.broadcast %cst_138 : f32 to vector<4x128xf32>
    %297 = arith.select %295, %293, %296 : vector<4x128xi1>, vector<4x128xf32>
    %298 = arith.truncf %297 : vector<4x128xf32> to vector<4x128xbf16>
    %cst_139 = arith.constant dense<0.000000e+00> : vector<8x128xf32>
    %299 = tpu.matmul %292, %298, %cst_139 {dimension_numbers = #tpu.dot_dimension_numbers<[1], [0], [0], [1], [0, 0, 1, 1], [], []>} : vector<8x4xbf16>, vector<4x128xbf16>, vector<8x128xf32> -> vector<8x128xf32>
    %300 = arith.addf %290, %299 : vector<8x128xf32>
    %c14 = arith.constant 14 : index
    %c0_140 = arith.constant 0 : index
    %c0_141 = arith.constant 0 : index
    %301 = vector.load %arg3[%c14, %c0_140, %c0_141] : memref<16x8x4xbf16, #tpu.memory_space<vmem>>, vector<1x8x4xbf16>
    %302 = vector.shape_cast %301 : vector<1x8x4xbf16> to vector<8x4xbf16>
    %c120_i32_142 = arith.constant 120 : i32
    %303 = tpu.dynamic_rotate %167 by %c120_i32_142 dim 1 : vector<4x128xf32>, i32 -> vector<4x128xf32>
    %cst_143 = arith.constant 0.000000e+00 : f32
    %304 = vector.shape_cast %134 : vector<1x128xi1> to vector<1x128xi1>
    %305 = vector.broadcast %304 : vector<1x128xi1> to vector<4x128xi1>
    %306 = vector.broadcast %cst_143 : f32 to vector<4x128xf32>
    %307 = arith.select %305, %303, %306 : vector<4x128xi1>, vector<4x128xf32>
    %308 = arith.truncf %307 : vector<4x128xf32> to vector<4x128xbf16>
    %cst_144 = arith.constant dense<0.000000e+00> : vector<8x128xf32>
    %309 = tpu.matmul %302, %308, %cst_144 {dimension_numbers = #tpu.dot_dimension_numbers<[1], [0], [0], [1], [0, 0, 1, 1], [], []>} : vector<8x4xbf16>, vector<4x128xbf16>, vector<8x128xf32> -> vector<8x128xf32>
    %310 = arith.addf %300, %309 : vector<8x128xf32>
    %c15 = arith.constant 15 : index
    %c0_145 = arith.constant 0 : index
    %c0_146 = arith.constant 0 : index
    %311 = vector.load %arg3[%c15, %c0_145, %c0_146] : memref<16x8x4xbf16, #tpu.memory_space<vmem>>, vector<1x8x4xbf16>
    %312 = vector.shape_cast %311 : vector<1x8x4xbf16> to vector<8x4xbf16>
    %c119_i32 = arith.constant 119 : i32
    %313 = tpu.dynamic_rotate %160 by %c119_i32 dim 1 : vector<4x128xf32>, i32 -> vector<4x128xf32>
    %cst_147 = arith.constant 0.000000e+00 : f32
    %314 = vector.shape_cast %153 : vector<1x128xi1> to vector<1x128xi1>
    %315 = vector.broadcast %314 : vector<1x128xi1> to vector<4x128xi1>
    %316 = vector.broadcast %cst_147 : f32 to vector<4x128xf32>
    %317 = arith.select %315, %313, %316 : vector<4x128xi1>, vector<4x128xf32>
    %318 = arith.truncf %317 : vector<4x128xf32> to vector<4x128xbf16>
    %cst_148 = arith.constant dense<0.000000e+00> : vector<8x128xf32>
    %319 = tpu.matmul %312, %318, %cst_148 {dimension_numbers = #tpu.dot_dimension_numbers<[1], [0], [0], [1], [0, 0, 1, 1], [], []>} : vector<8x4xbf16>, vector<4x128xbf16>, vector<8x128xf32> -> vector<8x128xf32>
    %320 = arith.addf %310, %319 : vector<8x128xf32>
    %c0_149 = arith.constant 0 : index
    %c0_150 = arith.constant 0 : index
    %321 = vector.load %arg4[%c0_149, %c0_150] : memref<8x1xf32, #tpu.memory_space<vmem>>, vector<8x1xf32>
    %322 = vector.broadcast %321 : vector<8x1xf32> to vector<8x128xf32>
    %323 = arith.addf %320, %322 : vector<8x128xf32>
    %cst_151 = arith.constant 0.000000e+00 : f32
    %324 = vector.broadcast %cst_151 : f32 to vector<8x128xf32>
    %325 = arith.maximumf %323, %324 : vector<8x128xf32>
    %c9_i32_152 = arith.constant 9 : i32
    %326 = tpu.dynamic_rotate %325 by %c9_i32_152 dim 1 : vector<8x128xf32>, i32 -> vector<8x128xf32>
    %cst_153 = arith.constant 0.000000e+00 : f32
    %327 = vector.shape_cast %20 : vector<1x128xi1> to vector<1x128xi1>
    %328 = vector.broadcast %327 : vector<1x128xi1> to vector<8x128xi1>
    %329 = vector.broadcast %cst_153 : f32 to vector<8x128xf32>
    %330 = arith.select %328, %326, %329 : vector<8x128xi1>, vector<8x128xf32>
    %331 = arith.truncf %330 : vector<8x128xf32> to vector<8x128xbf16>
    %c8_i32_154 = arith.constant 8 : i32
    %332 = tpu.dynamic_rotate %325 by %c8_i32_154 dim 1 : vector<8x128xf32>, i32 -> vector<8x128xf32>
    %cst_155 = arith.constant 0.000000e+00 : f32
    %333 = vector.shape_cast %39 : vector<1x128xi1> to vector<1x128xi1>
    %334 = vector.broadcast %333 : vector<1x128xi1> to vector<8x128xi1>
    %335 = vector.broadcast %cst_155 : f32 to vector<8x128xf32>
    %336 = arith.select %334, %332, %335 : vector<8x128xi1>, vector<8x128xf32>
    %337 = arith.truncf %336 : vector<8x128xf32> to vector<8x128xbf16>
    %c7_i32_156 = arith.constant 7 : i32
    %338 = tpu.dynamic_rotate %325 by %c7_i32_156 dim 1 : vector<8x128xf32>, i32 -> vector<8x128xf32>
    %cst_157 = arith.constant 0.000000e+00 : f32
    %339 = vector.shape_cast %58 : vector<1x128xi1> to vector<1x128xi1>
    %340 = vector.broadcast %339 : vector<1x128xi1> to vector<8x128xi1>
    %341 = vector.broadcast %cst_157 : f32 to vector<8x128xf32>
    %342 = arith.select %340, %338, %341 : vector<8x128xi1>, vector<8x128xf32>
    %343 = arith.truncf %342 : vector<8x128xf32> to vector<8x128xbf16>
    %c1_i32_158 = arith.constant 1 : i32
    %344 = tpu.dynamic_rotate %325 by %c1_i32_158 dim 1 : vector<8x128xf32>, i32 -> vector<8x128xf32>
    %cst_159 = arith.constant 0.000000e+00 : f32
    %345 = vector.shape_cast %77 : vector<1x128xi1> to vector<1x128xi1>
    %346 = vector.broadcast %345 : vector<1x128xi1> to vector<8x128xi1>
    %347 = vector.broadcast %cst_159 : f32 to vector<8x128xf32>
    %348 = arith.select %346, %344, %347 : vector<8x128xi1>, vector<8x128xf32>
    %349 = arith.truncf %348 : vector<8x128xf32> to vector<8x128xbf16>
    %350 = arith.truncf %325 : vector<8x128xf32> to vector<8x128xbf16>
    %c127_i32_160 = arith.constant 127 : i32
    %351 = tpu.dynamic_rotate %325 by %c127_i32_160 dim 1 : vector<8x128xf32>, i32 -> vector<8x128xf32>
    %cst_161 = arith.constant 0.000000e+00 : f32
    %352 = vector.shape_cast %96 : vector<1x128xi1> to vector<1x128xi1>
    %353 = vector.broadcast %352 : vector<1x128xi1> to vector<8x128xi1>
    %354 = vector.broadcast %cst_161 : f32 to vector<8x128xf32>
    %355 = arith.select %353, %351, %354 : vector<8x128xi1>, vector<8x128xf32>
    %356 = arith.truncf %355 : vector<8x128xf32> to vector<8x128xbf16>
    %c121_i32_162 = arith.constant 121 : i32
    %357 = tpu.dynamic_rotate %325 by %c121_i32_162 dim 1 : vector<8x128xf32>, i32 -> vector<8x128xf32>
    %cst_163 = arith.constant 0.000000e+00 : f32
    %358 = vector.shape_cast %115 : vector<1x128xi1> to vector<1x128xi1>
    %359 = vector.broadcast %358 : vector<1x128xi1> to vector<8x128xi1>
    %360 = vector.broadcast %cst_163 : f32 to vector<8x128xf32>
    %361 = arith.select %359, %357, %360 : vector<8x128xi1>, vector<8x128xf32>
    %362 = arith.truncf %361 : vector<8x128xf32> to vector<8x128xbf16>
    %c120_i32_164 = arith.constant 120 : i32
    %363 = tpu.dynamic_rotate %325 by %c120_i32_164 dim 1 : vector<8x128xf32>, i32 -> vector<8x128xf32>
    %cst_165 = arith.constant 0.000000e+00 : f32
    %364 = vector.shape_cast %134 : vector<1x128xi1> to vector<1x128xi1>
    %365 = vector.broadcast %364 : vector<1x128xi1> to vector<8x128xi1>
    %366 = vector.broadcast %cst_165 : f32 to vector<8x128xf32>
    %367 = arith.select %365, %363, %366 : vector<8x128xi1>, vector<8x128xf32>
    %368 = arith.truncf %367 : vector<8x128xf32> to vector<8x128xbf16>
    %c119_i32_166 = arith.constant 119 : i32
    %369 = tpu.dynamic_rotate %325 by %c119_i32_166 dim 1 : vector<8x128xf32>, i32 -> vector<8x128xf32>
    %cst_167 = arith.constant 0.000000e+00 : f32
    %370 = vector.shape_cast %153 : vector<1x128xi1> to vector<1x128xi1>
    %371 = vector.broadcast %370 : vector<1x128xi1> to vector<8x128xi1>
    %372 = vector.broadcast %cst_167 : f32 to vector<8x128xf32>
    %373 = arith.select %371, %369, %372 : vector<8x128xi1>, vector<8x128xf32>
    %374 = arith.truncf %373 : vector<8x128xf32> to vector<8x128xbf16>
    %c0_168 = arith.constant 0 : index
    %c0_169 = arith.constant 0 : index
    %c0_170 = arith.constant 0 : index
    %375 = vector.load %arg5[%c0_168, %c0_169, %c0_170] : memref<16x4x8xbf16, #tpu.memory_space<vmem>>, vector<1x4x8xbf16>
    %376 = vector.shape_cast %375 : vector<1x4x8xbf16> to vector<4x8xbf16>
    %cst_171 = arith.constant dense<0.000000e+00> : vector<4x128xf32>
    %377 = tpu.matmul %376, %331, %cst_171 {dimension_numbers = #tpu.dot_dimension_numbers<[1], [0], [0], [1], [0, 0, 1, 1], [], []>} : vector<4x8xbf16>, vector<8x128xbf16>, vector<4x128xf32> -> vector<4x128xf32>
    %c1_172 = arith.constant 1 : index
    %c0_173 = arith.constant 0 : index
    %c0_174 = arith.constant 0 : index
    %378 = vector.load %arg5[%c1_172, %c0_173, %c0_174] : memref<16x4x8xbf16, #tpu.memory_space<vmem>>, vector<1x4x8xbf16>
    %379 = vector.shape_cast %378 : vector<1x4x8xbf16> to vector<4x8xbf16>
    %cst_175 = arith.constant dense<0.000000e+00> : vector<4x128xf32>
    %380 = tpu.matmul %379, %337, %cst_175 {dimension_numbers = #tpu.dot_dimension_numbers<[1], [0], [0], [1], [0, 0, 1, 1], [], []>} : vector<4x8xbf16>, vector<8x128xbf16>, vector<4x128xf32> -> vector<4x128xf32>
    %381 = arith.addf %377, %380 : vector<4x128xf32>
    %c2_176 = arith.constant 2 : index
    %c0_177 = arith.constant 0 : index
    %c0_178 = arith.constant 0 : index
    %382 = vector.load %arg5[%c2_176, %c0_177, %c0_178] : memref<16x4x8xbf16, #tpu.memory_space<vmem>>, vector<1x4x8xbf16>
    %383 = vector.shape_cast %382 : vector<1x4x8xbf16> to vector<4x8xbf16>
    %cst_179 = arith.constant dense<0.000000e+00> : vector<4x128xf32>
    %384 = tpu.matmul %383, %349, %cst_179 {dimension_numbers = #tpu.dot_dimension_numbers<[1], [0], [0], [1], [0, 0, 1, 1], [], []>} : vector<4x8xbf16>, vector<8x128xbf16>, vector<4x128xf32> -> vector<4x128xf32>
    %385 = arith.addf %381, %384 : vector<4x128xf32>
    %c3_180 = arith.constant 3 : index
    %c0_181 = arith.constant 0 : index
    %c0_182 = arith.constant 0 : index
    %386 = vector.load %arg5[%c3_180, %c0_181, %c0_182] : memref<16x4x8xbf16, #tpu.memory_space<vmem>>, vector<1x4x8xbf16>
    %387 = vector.shape_cast %386 : vector<1x4x8xbf16> to vector<4x8xbf16>
    %cst_183 = arith.constant dense<0.000000e+00> : vector<4x128xf32>
    %388 = tpu.matmul %387, %350, %cst_183 {dimension_numbers = #tpu.dot_dimension_numbers<[1], [0], [0], [1], [0, 0, 1, 1], [], []>} : vector<4x8xbf16>, vector<8x128xbf16>, vector<4x128xf32> -> vector<4x128xf32>
    %389 = arith.addf %385, %388 : vector<4x128xf32>
    %c0_184 = arith.constant 0 : index
    %c0_185 = arith.constant 0 : index
    %390 = vector.load %arg6[%c0_184, %c0_185] : memref<4x1xf32, #tpu.memory_space<vmem>>, vector<4x1xf32>
    %391 = vector.broadcast %390 : vector<4x1xf32> to vector<4x128xf32>
    %392 = arith.addf %389, %391 : vector<4x128xf32>
    %c4_186 = arith.constant 4 : index
    %c0_187 = arith.constant 0 : index
    %c0_188 = arith.constant 0 : index
    %393 = vector.load %arg5[%c4_186, %c0_187, %c0_188] : memref<16x4x8xbf16, #tpu.memory_space<vmem>>, vector<1x4x8xbf16>
    %394 = vector.shape_cast %393 : vector<1x4x8xbf16> to vector<4x8xbf16>
    %cst_189 = arith.constant dense<0.000000e+00> : vector<4x128xf32>
    %395 = tpu.matmul %394, %337, %cst_189 {dimension_numbers = #tpu.dot_dimension_numbers<[1], [0], [0], [1], [0, 0, 1, 1], [], []>} : vector<4x8xbf16>, vector<8x128xbf16>, vector<4x128xf32> -> vector<4x128xf32>
    %c5_190 = arith.constant 5 : index
    %c0_191 = arith.constant 0 : index
    %c0_192 = arith.constant 0 : index
    %396 = vector.load %arg5[%c5_190, %c0_191, %c0_192] : memref<16x4x8xbf16, #tpu.memory_space<vmem>>, vector<1x4x8xbf16>
    %397 = vector.shape_cast %396 : vector<1x4x8xbf16> to vector<4x8xbf16>
    %cst_193 = arith.constant dense<0.000000e+00> : vector<4x128xf32>
    %398 = tpu.matmul %397, %343, %cst_193 {dimension_numbers = #tpu.dot_dimension_numbers<[1], [0], [0], [1], [0, 0, 1, 1], [], []>} : vector<4x8xbf16>, vector<8x128xbf16>, vector<4x128xf32> -> vector<4x128xf32>
    %399 = arith.addf %395, %398 : vector<4x128xf32>
    %c6_194 = arith.constant 6 : index
    %c0_195 = arith.constant 0 : index
    %c0_196 = arith.constant 0 : index
    %400 = vector.load %arg5[%c6_194, %c0_195, %c0_196] : memref<16x4x8xbf16, #tpu.memory_space<vmem>>, vector<1x4x8xbf16>
    %401 = vector.shape_cast %400 : vector<1x4x8xbf16> to vector<4x8xbf16>
    %cst_197 = arith.constant dense<0.000000e+00> : vector<4x128xf32>
    %402 = tpu.matmul %401, %350, %cst_197 {dimension_numbers = #tpu.dot_dimension_numbers<[1], [0], [0], [1], [0, 0, 1, 1], [], []>} : vector<4x8xbf16>, vector<8x128xbf16>, vector<4x128xf32> -> vector<4x128xf32>
    %403 = arith.addf %399, %402 : vector<4x128xf32>
    %c7_198 = arith.constant 7 : index
    %c0_199 = arith.constant 0 : index
    %c0_200 = arith.constant 0 : index
    %404 = vector.load %arg5[%c7_198, %c0_199, %c0_200] : memref<16x4x8xbf16, #tpu.memory_space<vmem>>, vector<1x4x8xbf16>
    %405 = vector.shape_cast %404 : vector<1x4x8xbf16> to vector<4x8xbf16>
    %cst_201 = arith.constant dense<0.000000e+00> : vector<4x128xf32>
    %406 = tpu.matmul %405, %356, %cst_201 {dimension_numbers = #tpu.dot_dimension_numbers<[1], [0], [0], [1], [0, 0, 1, 1], [], []>} : vector<4x8xbf16>, vector<8x128xbf16>, vector<4x128xf32> -> vector<4x128xf32>
    %407 = arith.addf %403, %406 : vector<4x128xf32>
    %c0_202 = arith.constant 0 : index
    %c0_203 = arith.constant 0 : index
    %408 = vector.load %arg6[%c0_202, %c0_203] : memref<4x1xf32, #tpu.memory_space<vmem>>, vector<4x1xf32>
    %409 = vector.broadcast %408 : vector<4x1xf32> to vector<4x128xf32>
    %410 = arith.addf %407, %409 : vector<4x128xf32>
    %c8_204 = arith.constant 8 : index
    %c0_205 = arith.constant 0 : index
    %c0_206 = arith.constant 0 : index
    %411 = vector.load %arg5[%c8_204, %c0_205, %c0_206] : memref<16x4x8xbf16, #tpu.memory_space<vmem>>, vector<1x4x8xbf16>
    %412 = vector.shape_cast %411 : vector<1x4x8xbf16> to vector<4x8xbf16>
    %cst_207 = arith.constant dense<0.000000e+00> : vector<4x128xf32>
    %413 = tpu.matmul %412, %349, %cst_207 {dimension_numbers = #tpu.dot_dimension_numbers<[1], [0], [0], [1], [0, 0, 1, 1], [], []>} : vector<4x8xbf16>, vector<8x128xbf16>, vector<4x128xf32> -> vector<4x128xf32>
    %c9_208 = arith.constant 9 : index
    %c0_209 = arith.constant 0 : index
    %c0_210 = arith.constant 0 : index
    %414 = vector.load %arg5[%c9_208, %c0_209, %c0_210] : memref<16x4x8xbf16, #tpu.memory_space<vmem>>, vector<1x4x8xbf16>
    %415 = vector.shape_cast %414 : vector<1x4x8xbf16> to vector<4x8xbf16>
    %cst_211 = arith.constant dense<0.000000e+00> : vector<4x128xf32>
    %416 = tpu.matmul %415, %350, %cst_211 {dimension_numbers = #tpu.dot_dimension_numbers<[1], [0], [0], [1], [0, 0, 1, 1], [], []>} : vector<4x8xbf16>, vector<8x128xbf16>, vector<4x128xf32> -> vector<4x128xf32>
    %417 = arith.addf %413, %416 : vector<4x128xf32>
    %c10_212 = arith.constant 10 : index
    %c0_213 = arith.constant 0 : index
    %c0_214 = arith.constant 0 : index
    %418 = vector.load %arg5[%c10_212, %c0_213, %c0_214] : memref<16x4x8xbf16, #tpu.memory_space<vmem>>, vector<1x4x8xbf16>
    %419 = vector.shape_cast %418 : vector<1x4x8xbf16> to vector<4x8xbf16>
    %cst_215 = arith.constant dense<0.000000e+00> : vector<4x128xf32>
    %420 = tpu.matmul %419, %362, %cst_215 {dimension_numbers = #tpu.dot_dimension_numbers<[1], [0], [0], [1], [0, 0, 1, 1], [], []>} : vector<4x8xbf16>, vector<8x128xbf16>, vector<4x128xf32> -> vector<4x128xf32>
    %421 = arith.addf %417, %420 : vector<4x128xf32>
    %c11_216 = arith.constant 11 : index
    %c0_217 = arith.constant 0 : index
    %c0_218 = arith.constant 0 : index
    %422 = vector.load %arg5[%c11_216, %c0_217, %c0_218] : memref<16x4x8xbf16, #tpu.memory_space<vmem>>, vector<1x4x8xbf16>
    %423 = vector.shape_cast %422 : vector<1x4x8xbf16> to vector<4x8xbf16>
    %cst_219 = arith.constant dense<0.000000e+00> : vector<4x128xf32>
    %424 = tpu.matmul %423, %368, %cst_219 {dimension_numbers = #tpu.dot_dimension_numbers<[1], [0], [0], [1], [0, 0, 1, 1], [], []>} : vector<4x8xbf16>, vector<8x128xbf16>, vector<4x128xf32> -> vector<4x128xf32>
    %425 = arith.addf %421, %424 : vector<4x128xf32>
    %c0_220 = arith.constant 0 : index
    %c0_221 = arith.constant 0 : index
    %426 = vector.load %arg6[%c0_220, %c0_221] : memref<4x1xf32, #tpu.memory_space<vmem>>, vector<4x1xf32>
    %427 = vector.broadcast %426 : vector<4x1xf32> to vector<4x128xf32>
    %428 = arith.addf %425, %427 : vector<4x128xf32>
    %c12_222 = arith.constant 12 : index
    %c0_223 = arith.constant 0 : index
    %c0_224 = arith.constant 0 : index
    %429 = vector.load %arg5[%c12_222, %c0_223, %c0_224] : memref<16x4x8xbf16, #tpu.memory_space<vmem>>, vector<1x4x8xbf16>
    %430 = vector.shape_cast %429 : vector<1x4x8xbf16> to vector<4x8xbf16>
    %cst_225 = arith.constant dense<0.000000e+00> : vector<4x128xf32>
    %431 = tpu.matmul %430, %350, %cst_225 {dimension_numbers = #tpu.dot_dimension_numbers<[1], [0], [0], [1], [0, 0, 1, 1], [], []>} : vector<4x8xbf16>, vector<8x128xbf16>, vector<4x128xf32> -> vector<4x128xf32>
    %c13_226 = arith.constant 13 : index
    %c0_227 = arith.constant 0 : index
    %c0_228 = arith.constant 0 : index
    %432 = vector.load %arg5[%c13_226, %c0_227, %c0_228] : memref<16x4x8xbf16, #tpu.memory_space<vmem>>, vector<1x4x8xbf16>
    %433 = vector.shape_cast %432 : vector<1x4x8xbf16> to vector<4x8xbf16>
    %cst_229 = arith.constant dense<0.000000e+00> : vector<4x128xf32>
    %434 = tpu.matmul %433, %356, %cst_229 {dimension_numbers = #tpu.dot_dimension_numbers<[1], [0], [0], [1], [0, 0, 1, 1], [], []>} : vector<4x8xbf16>, vector<8x128xbf16>, vector<4x128xf32> -> vector<4x128xf32>
    %435 = arith.addf %431, %434 : vector<4x128xf32>
    %c14_230 = arith.constant 14 : index
    %c0_231 = arith.constant 0 : index
    %c0_232 = arith.constant 0 : index
    %436 = vector.load %arg5[%c14_230, %c0_231, %c0_232] : memref<16x4x8xbf16, #tpu.memory_space<vmem>>, vector<1x4x8xbf16>
    %437 = vector.shape_cast %436 : vector<1x4x8xbf16> to vector<4x8xbf16>
    %cst_233 = arith.constant dense<0.000000e+00> : vector<4x128xf32>
    %438 = tpu.matmul %437, %368, %cst_233 {dimension_numbers = #tpu.dot_dimension_numbers<[1], [0], [0], [1], [0, 0, 1, 1], [], []>} : vector<4x8xbf16>, vector<8x128xbf16>, vector<4x128xf32> -> vector<4x128xf32>
    %439 = arith.addf %435, %438 : vector<4x128xf32>
    %c15_234 = arith.constant 15 : index
    %c0_235 = arith.constant 0 : index
    %c0_236 = arith.constant 0 : index
    %440 = vector.load %arg5[%c15_234, %c0_235, %c0_236] : memref<16x4x8xbf16, #tpu.memory_space<vmem>>, vector<1x4x8xbf16>
    %441 = vector.shape_cast %440 : vector<1x4x8xbf16> to vector<4x8xbf16>
    %cst_237 = arith.constant dense<0.000000e+00> : vector<4x128xf32>
    %442 = tpu.matmul %441, %374, %cst_237 {dimension_numbers = #tpu.dot_dimension_numbers<[1], [0], [0], [1], [0, 0, 1, 1], [], []>} : vector<4x8xbf16>, vector<8x128xbf16>, vector<4x128xf32> -> vector<4x128xf32>
    %443 = arith.addf %439, %442 : vector<4x128xf32>
    %c0_238 = arith.constant 0 : index
    %c0_239 = arith.constant 0 : index
    %444 = vector.load %arg6[%c0_238, %c0_239] : memref<4x1xf32, #tpu.memory_space<vmem>>, vector<4x1xf32>
    %445 = vector.broadcast %444 : vector<4x1xf32> to vector<4x128xf32>
    %446 = arith.addf %443, %445 : vector<4x128xf32>
    %447 = arith.addf %392, %410 : vector<4x128xf32>
    %448 = arith.addf %447, %428 : vector<4x128xf32>
    %449 = arith.addf %448, %446 : vector<4x128xf32>
    %cst_240 = arith.constant dense<0.000000e+00> : vector<4xf32>
    %450 = vector.multi_reduction <add>, %449, %cst_240 [1] : vector<4x128xf32> to vector<4xf32>
    %451 = vector.shape_cast %450 : vector<4xf32> to vector<4x1xf32>
    %cst_241 = arith.constant 0.001953125 : f32
    %452 = vector.broadcast %cst_241 : f32 to vector<4x1xf32>
    %453 = arith.mulf %451, %452 : vector<4x1xf32>
    %454 = vector.broadcast %453 : vector<4x1xf32> to vector<4x128xf32>
    %455 = arith.subf %392, %454 : vector<4x128xf32>
    %456 = vector.broadcast %453 : vector<4x1xf32> to vector<4x128xf32>
    %457 = arith.subf %410, %456 : vector<4x128xf32>
    %458 = vector.broadcast %453 : vector<4x1xf32> to vector<4x128xf32>
    %459 = arith.subf %428, %458 : vector<4x128xf32>
    %460 = vector.broadcast %453 : vector<4x1xf32> to vector<4x128xf32>
    %461 = arith.subf %446, %460 : vector<4x128xf32>
    %462 = arith.mulf %455, %455 : vector<4x128xf32>
    %463 = arith.mulf %457, %457 : vector<4x128xf32>
    %464 = arith.addf %462, %463 : vector<4x128xf32>
    %465 = arith.mulf %459, %459 : vector<4x128xf32>
    %466 = arith.addf %464, %465 : vector<4x128xf32>
    %467 = arith.mulf %461, %461 : vector<4x128xf32>
    %468 = arith.addf %466, %467 : vector<4x128xf32>
    %cst_242 = arith.constant dense<0.000000e+00> : vector<4xf32>
    %469 = vector.multi_reduction <add>, %468, %cst_242 [1] : vector<4x128xf32> to vector<4xf32>
    %470 = vector.shape_cast %469 : vector<4xf32> to vector<4x1xf32>
    %cst_243 = arith.constant 0.001953125 : f32
    %471 = vector.broadcast %cst_243 : f32 to vector<4x1xf32>
    %472 = arith.mulf %470, %471 : vector<4x1xf32>
    %c0_244 = arith.constant 0 : index
    %c0_245 = arith.constant 0 : index
    %473 = vector.load %arg7[%c0_244, %c0_245] : memref<4x1xf32, #tpu.memory_space<vmem>>, vector<4x1xf32>
    %cst_246 = arith.constant 9.99999974E-6 : f32
    %474 = vector.broadcast %cst_246 : f32 to vector<4x1xf32>
    %475 = arith.addf %472, %474 : vector<4x1xf32>
    %476 = math.rsqrt %475 : vector<4x1xf32>
    %477 = arith.mulf %473, %476 : vector<4x1xf32>
    %478 = vector.broadcast %477 : vector<4x1xf32> to vector<4x128xf32>
    %479 = arith.mulf %478, %455 : vector<4x128xf32>
    %c0_247 = arith.constant 0 : index
    %c0_248 = arith.constant 0 : index
    %480 = vector.load %arg8[%c0_247, %c0_248] : memref<4x1xf32, #tpu.memory_space<vmem>>, vector<4x1xf32>
    %481 = vector.broadcast %480 : vector<4x1xf32> to vector<4x128xf32>
    %482 = arith.addf %479, %481 : vector<4x128xf32>
    %483 = vector.broadcast %477 : vector<4x1xf32> to vector<4x128xf32>
    %484 = arith.mulf %483, %457 : vector<4x128xf32>
    %c0_249 = arith.constant 0 : index
    %c0_250 = arith.constant 0 : index
    %485 = vector.load %arg8[%c0_249, %c0_250] : memref<4x1xf32, #tpu.memory_space<vmem>>, vector<4x1xf32>
    %486 = vector.broadcast %485 : vector<4x1xf32> to vector<4x128xf32>
    %487 = arith.addf %484, %486 : vector<4x128xf32>
    %488 = vector.broadcast %477 : vector<4x1xf32> to vector<4x128xf32>
    %489 = arith.mulf %488, %459 : vector<4x128xf32>
    %c0_251 = arith.constant 0 : index
    %c0_252 = arith.constant 0 : index
    %490 = vector.load %arg8[%c0_251, %c0_252] : memref<4x1xf32, #tpu.memory_space<vmem>>, vector<4x1xf32>
    %491 = vector.broadcast %490 : vector<4x1xf32> to vector<4x128xf32>
    %492 = arith.addf %489, %491 : vector<4x128xf32>
    %493 = vector.broadcast %477 : vector<4x1xf32> to vector<4x128xf32>
    %494 = arith.mulf %493, %461 : vector<4x128xf32>
    %c0_253 = arith.constant 0 : index
    %c0_254 = arith.constant 0 : index
    %495 = vector.load %arg8[%c0_253, %c0_254] : memref<4x1xf32, #tpu.memory_space<vmem>>, vector<4x1xf32>
    %496 = vector.broadcast %495 : vector<4x1xf32> to vector<4x128xf32>
    %497 = arith.addf %494, %496 : vector<4x128xf32>
    %498 = tpu.concatenate %482, %487, %492, %497 in 0 : vector<4x128xf32>, vector<4x128xf32>, vector<4x128xf32>, vector<4x128xf32> -> vector<16x128xf32>
    %c0_255 = arith.constant 0 : index
    %c0_256 = arith.constant 0 : index
    %499 = vector.load %arg9[%c0_255, %c0_256] : memref<16x128xf32, #tpu.memory_space<vmem>>, vector<16x128xf32>
    tpu.vector_store %arg9[%c0_255, %c0_256], %498 {strides = array<i32>} : memref<16x128xf32, #tpu.memory_space<vmem>>, vector<16x128xf32>,
    return
  }
  func.func @transform_0(%arg0: i32) -> (i32, i32) {
    %c0_i32 = arith.constant 0 : i32
    %c0_i32_0 = arith.constant 0 : i32
    %c0_i32_1 = arith.constant 0 : i32
    return %c0_i32, %c0_i32_0 : i32, i32
  }
  func.func @transform_1(%arg0: i32) -> (i32, i32, i32) {
    %c0_i32 = arith.constant 0 : i32
    %c0_i32_0 = arith.constant 0 : i32
    %c0_i32_1 = arith.constant 0 : i32
    %c0_i32_2 = arith.constant 0 : i32
    return %c0_i32, %c0_i32_0, %c0_i32_1 : i32, i32, i32
  }
  func.func @transform_2(%arg0: i32) -> (i32, i32, i32) {
    %c0_i32 = arith.constant 0 : i32
    %c0_i32_0 = arith.constant 0 : i32
    %c0_i32_1 = arith.constant 0 : i32
    %c0_i32_2 = arith.constant 0 : i32
    return %c0_i32, %c0_i32_0, %c0_i32_1 : i32, i32, i32
  }
  func.func @transform_3(%arg0: i32) -> (i32, i32) {
    %c0_i32 = arith.constant 0 : i32
    %c0_i32_0 = arith.constant 0 : i32
    %c0_i32_1 = arith.constant 0 : i32
    return %c0_i32, %c0_i32_0 : i32, i32
  }
  func.func @transform_4(%arg0: i32) -> (i32, i32, i32) {
    %c0_i32 = arith.constant 0 : i32
    %c0_i32_0 = arith.constant 0 : i32
    %c0_i32_1 = arith.constant 0 : i32
    %c0_i32_2 = arith.constant 0 : i32
    return %c0_i32, %c0_i32_0, %c0_i32_1 : i32, i32, i32
  }
  func.func @transform_5(%arg0: i32) -> (i32, i32) {
    %c0_i32 = arith.constant 0 : i32
    %c0_i32_0 = arith.constant 0 : i32
    %c0_i32_1 = arith.constant 0 : i32
    return %c0_i32, %c0_i32_0 : i32, i32
  }
  func.func @transform_6(%arg0: i32) -> (i32, i32) {
    %c0_i32 = arith.constant 0 : i32
    %c0_i32_0 = arith.constant 0 : i32
    %c0_i32_1 = arith.constant 0 : i32
    return %c0_i32, %c0_i32_0 : i32, i32
  }
  func.func @transform_7(%arg0: i32) -> (i32, i32) {
    %c0_i32 = arith.constant 0 : i32
    %c0_i32_0 = arith.constant 0 : i32
    %c0_i32_1 = arith.constant 0 : i32
    return %c0_i32, %c0_i32_0 : i32, i32
  }
  func.func @transform_8(%arg0: i32) -> (i32, i32) {
    %c0_i32 = arith.constant 0 : i32
    %c0_i32_0 = arith.constant 0 : i32
    %c0_i32_1 = arith.constant 0 : i32
    return %c0_i32, %c0_i32_0 : i32, i32
  }
}

</mosaic_0001>

<bundles_post_ra>
// kernel: unet_innermost_forward.1
= control target key start
LH: loop header
LB: loop body
LE: loop exit
PB: predicated region body
PF: predicated region fallthrough
CT: control target
= control target key end

     0   :  { %v2171_v2 = vmov 0.0   ;;  %v2172_v5 = vmov 0   ;;  %s2173_s13 = smov 8   ;;  %vm2174_vm4 = vmmov 0   ;;  %s2176_s14 = smov 7   ;;  %v90_v20 = vlaneseq  ;;  %s2742_s1 = inlined_call_operand.vmem [shape: f32[4,4,128], index: 1, kind: input, shape index: {}]   ;;  %s2743_s3 = inlined_call_operand.vmem [shape: f32[8,1], index: 3, kind: input, shape index: {}]   ;;  %s2744_s0 = inlined_call_operand.vmem [shape: s32[2,128], index: 0, kind: input, shape index: {}]   ;;  %s2745_s2 = inlined_call_operand.vmem [shape: bf16[16,8,4], index: 2, kind: input, shape index: {}]   ;;  %s2746_s5 = inlined_call_operand.vmem [shape: f32[4,1], index: 5, kind: input, shape index: {}]   ;;  %s2747_s4 = inlined_call_operand.vmem [shape: bf16[16,4,8], index: 4, kind: input, shape index: {}]   ;;  %s2748_s7 = inlined_call_operand.vmem [shape: f32[4,1], index: 7, kind: input, shape index: {}]   ;;  %s2749_s6 = inlined_call_operand.vmem [shape: f32[4,1], index: 6, kind: input, shape index: {}]   ;;  %s2750_s8 = inlined_call_operand.vmem [shape: f32[16,128], index: 8, kind: output, shape index: {}]  }
   0x1   :  { %v1836_v0 = vld [vmem:[%s2742_s1 + $0x8] sm:$0xf]  ;;  %v1837_v1 = vld [vmem:[%s2742_s1 + $0xc] sm:$0xf]  ;;  %1964 = vmatprep.subr.bf16.mxu0 %v2171_v2  ;;  %1970 = vmatprep.subr.bf16.mxu1 %v2171_v2  ;;  %v1835_v6 = vld [vmem:[%s2742_s1 + $0x4] sm:$0xf] }
   0x2   :  { %vm78_vm0 = vcmp.ge.f32.partialorder %v1836_v0, 0.0  ;;  %v79_v3 = vmul.f32 0.2, %v1836_v0  ;;  %vm83_vm1 = vcmp.ge.f32.partialorder %v1837_v1, 0.0  ;;  %v84_v4 = vmul.f32 0.2, %v1837_v1  ;;  %2167 = vset.pattern.permute.xlu0 %v2172_v5  ;;  %2168 = vset.pattern.permute.xlu1 %v2172_v5 }
   0x3   :  { %v67_v7 = vld [vmem:[%s2742_s1] sm:$0xf]  ;;  %v74_v10 = vmul.f32 0.2, %v1835_v6  ;;  %vm73_vm2 = vcmp.ge.f32.partialorder %v1835_v6, 0.0  ;;  %1966 = vmatprep.mubr.msk.bf16.mxu0 %vm2174_vm4, %v2171_v2  ;;  %1972 = vmatprep.mubr.msk.bf16.mxu1 %vm2174_vm4, %v2171_v2  ;;  %s2175_s1 = smov 9  }
   0x4   :  { %v2243_v8 = vsel %vm78_vm0, %v1836_v0, %v79_v3  ;;  %v2245_v9 = vsel %vm83_vm1, %v1837_v1, %v84_v4  ;;  %v69_v11 = vmul.f32 0.2, %v67_v7  ;;  %vm68_vm3 = vcmp.ge.f32.partialorder %v67_v7, 0.0  ;;  %s2177_s15 = smov 1   ;;  %s2178_s16 = smov 127   ;;  %v969_v14 = vld [vmem:[%s2743_s3] sm:$0xff] }
   0x5   :  { %99 = vrot.lane.b32.xlu0 %v2243_v8, %s2173_s13  ;;  %205 = vrot.lane.b32.xlu1 %v2245_v9, %s2173_s13  ;;  %v2259_v12 = vsel %vm73_vm2, %v1835_v6, %v74_v10  ;;  %s2179_s17 = smov 121   ;;  %s2180_s18 = smov 120   ;;  %v2285_v15 = vld [vmem:[%s2744_s0] sm:$0x1]  ;;  %v2291_v17 = vld [vmem:[%s2744_s0 + $0x1] sm:$0x1] }
   0x6   :  { %v2261_v13 = vsel %vm68_vm3, %v67_v7, %v69_v11  ;;  %s2181_s19 = smov 119   ;;  %v32_v16 = vadd.s32 4294967295, %v2285_v15  ;;  %vm41_vm8 = vcmp.ge.s32.totalorder %v2291_v17, 0  ;;  %v2299_v19 = vadd.s32 4294967295, %v2291_v17  ;;  %v1838_v46 = vld [vmem:[%s2745_s2 + $0x4] sm:$0xf] }
   0x7   :  { %v2302_v21 = vadd.s32 1, %v2291_v17  ;;  %vm43_vm10 = vcmp.lt.s32.totalorder %v2291_v17, 8  ;;  %v91_v22 = vshrl.u32 %v90_v20, 7  ;;  %vm50_vm14 = vcmp.ge.s32.totalorder %v2285_v15, 0  ;;  %v86_v54 = vld [vmem:[%s2745_s2] sm:$0xf] }
   0x8   :  { %vm33_vm5 = vcmp.ge.s32.totalorder %v32_v16, 0  ;;  %vm34_vm6 = vcmp.lt.s32.totalorder %v32_v16, 8  ;;  %vm37_vm11 = vcmp.ge.s32.totalorder %v2299_v19, 0  ;;  %vm51_vm15 = vcmp.lt.s32.totalorder %v2285_v15, 8  ;;  %v1841_v60 = vld [vmem:[%s2745_s2 + $0x8] sm:$0xf] }
   0x9   :  { %87 = vrot.lane.b32.xlu0 %v2245_v9, %s2175_s1  ;;  %258 = vrot.lane.b32.xlu1 %v2243_v8, %s2176_s14  ;;  %vm2293_vm7 = vmand %vm33_vm5, %vm34_vm6  ;;  %vm46_vm12 = vcmp.ge.s32.totalorder %v2302_v21, 0  ;;  %vm39_vm1 = vcmp.lt.s32.totalorder %v2299_v19, 8  ;;  %vm2751_vm3 = vcmp.lt.s32.totalorder %v2302_v21, 8  ;;  %v2325_v23 = vsub.s32 0, %v91_v22  ;;  %v1843_v3 = vld [vmem:[%s2745_s2 + $0xc] sm:$0xf] }
   0xa   :  { %vm42_vm9 = vmand %vm2293_vm7, %vm41_vm8  ;;  %v57_v61 = vadd.s32 1, %v2285_v15  ;;  %v376_v63 = vpack.c.bf16 %v2261_v13, %v2261_v13  ;;  %v426_v6 = vpack.c.bf16 %v2259_v12, %v2259_v12  ;;  %v1847_v16 = vld [vmem:[%s2745_s2 + $0x14] sm:$0xf]  ;;  %v1849_v22 = vld [vmem:[%s2745_s2 + $0x18] sm:$0xf]  ;;  %v638_v17 = vpack.c.bf16 %v2245_v9, %v2245_v9 }
   0xb   :  { %vm44_vm13 = vmand %vm42_vm9, %vm43_vm10  ;;  %v1872_v40 = vld [vmem:[%s2747_s4 + $0x4] sm:$0x3]  ;;  %v1876_v1 = vld [vmem:[%s2747_s4 + $0x8] sm:$0x3] }
   0xc   :  { %vm38_vm0 = vmand %vm2293_vm7, %vm37_vm11  ;;  %v101_v25 = vsel %vm44_vm13, 1, %v2172_v5 }
   0xd   :  { %317 = vrot.lane.b32.xlu0 %v2259_v12, %s2177_s15  ;;  %476 = vrot.lane.b32.xlu1 %v2261_v13, %s2178_s16  ;;  %vm47_vm2 = vmand %vm2293_vm7, %vm46_vm12  ;;  %v105_v26 = vrot.slane %v101_v25, %v2325_v23  ;;  %v588_v25 = vpack.c.bf16 %v2243_v8, %v2243_v8 }
   0xe   :  { %vm2327_vm5 = vmand %vm50_vm14, %vm51_vm15 }
   0xf   :  { %vm40_vm6 = vmand %vm38_vm0, %vm39_vm1  ;;  %vm2346_vm14 = vcmp.eq.s32.totalorder %v105_v26, 1  ;;  %vm113_vm0 = vcmask 1041408  }
  0x10   :  { %vm49_vm9 = vmand %vm47_vm2, %vm2751_vm3  ;;  %v89_v27 = vsel %vm40_vm6, 1, %v2172_v5  ;;  %v381_v4 = vsel %vm113_vm0, %v376_v63, 0  ;;  %v1867_v63 = vld [vmem:[%s2745_s2 + $0x3c] sm:$0xf] }
  0x11   :  { %535 = vrot.lane.b32.xlu0 %v2245_v9, %s2177_s15  ;;  %688 = vrot.lane.b32.xlu1 %v2243_v8, %s2178_s16  ;;  %vm53_vm7 = vmand %vm2327_vm5, %vm37_vm11  ;;  %v260_v28 = vsel %vm49_vm9, 1, %v2172_v5  ;;  %v93_v29 = vrot.slane %v89_v27, %v2325_v23  ;;  %vm109_vm9 = vcmask 31744   ;;  %v593_v8 = vsel %vm113_vm0, %v588_v25, 0  ;;  %v1853_v9 = vld [vmem:[%s2745_s2 + $0x20] sm:$0xf] }
  0x12   :  { %vm54_vm13 = vmand %vm53_vm7, %vm39_vm1  ;;  %v264_v31 = vrot.slane %v260_v28, %v2325_v23  ;;  %v1851_v28 = vld [vmem:[%s2745_s2 + $0x1c] sm:$0xf] }
  0x13   :  { %v319_v32 = vsel %vm54_vm13, 1, %v2172_v5  ;;  %vm2354_vm15 = vcmp.eq.s32.totalorder %v93_v29, 1  ;;  %vm55_vm6 = vmand %vm2327_vm5, %vm46_vm12 }
  0x14   :  { %vm2360_vm2 = vcmp.eq.s32.totalorder %v264_v31, 1  ;;  %v323_v41 = vrot.slane %v319_v32, %v2325_v23  ;;  %vm56_vm7 = vmand %vm55_vm6, %vm2751_vm3  ;;  %vm58_vm6 = vcmp.ge.s32.totalorder %v57_v61, 0 }
  0x15   :  { %741 = vrot.lane.b32.xlu0 %v2259_v12, %s2179_s17  ;;  %800 = vrot.lane.b32.xlu1 %v2261_v13, %s2180_s18  ;;  %v478_v56 = vsel %vm56_vm7, 1, %v2172_v5  ;;  %vm59_vm7 = vcmp.lt.s32.totalorder %v57_v61, 8 }
  0x16   :  { %vm2379_vm5 = vcmp.eq.s32.totalorder %v323_v41, 1  ;;  %v482_v59 = vrot.slane %v478_v56, %v2325_v23  ;;  %vm2427_vm3 = vmand %vm58_vm6, %vm59_vm7  ;;  %v1884_v41 = vld [vmem:[%s2747_s4 + $0x10] sm:$0x3] }
  0x17   :  { %vm61_vm6 = vmand %vm2427_vm3, %vm37_vm11 }
  0x18   :  { %vm2411_vm13 = vcmp.eq.s32.totalorder %v482_v59, 1  ;;  %vm62_vm7 = vmand %vm61_vm6, %vm39_vm1 }
  0x19   :  { %859 = vrot.lane.b32.xlu0 %v2259_v12, %s2180_s18  ;;  %912 = vrot.lane.b32.xlu1 %v2261_v13, %s2181_s19  ;;  %v1845_v13 = vld [vmem:[%s2745_s2 + $0x10] sm:$0xf]  ;;  %v431_v12 = vsel %vm113_vm0, %v426_v6, 0  ;;  %vm63_vm11 = vmand %vm2427_vm3, %vm41_vm8  ;;  %v743_v24 = vsel %vm62_vm7, 1, %v2172_v5 }
  0x1a   :  { %vm64_vm8 = vmand %vm63_vm11, %vm43_vm10  ;;  %v747_v27 = vrot.slane %v743_v24, %v2325_v23 }
  0x1b   :  { %v802_v29 = vsel %vm64_vm8, 1, %v2172_v5  ;;  %vm65_vm10 = vmand %vm2427_vm3, %vm46_vm12  ;;  %vm2770_vm12 = vcmp.lt.s32.totalorder %v2302_v21, 8 }
  0x1c   :  { %vm2490_vm1 = vcmp.eq.s32.totalorder %v747_v27, 1  ;;  %vm66_vm3 = vmand %vm65_vm10, %vm2770_vm12 }
  0x1d   :  { %972 = vperm.xlu0 %2167, %v969_v14   ;;  %v914_v21 = vsel %vm66_vm3, 1, %v2172_v5 }
  0x77   :  { %v100_v33 = vpop.permute.xlu0 %99  ;;  %v206_v34 = vpop.permute.xlu1 %205 }
  0x78   :  { %v107_v35 = vsel %vm2346_vm14, %v100_v33, 0.0  ;;  %v207_v37 = vsel %vm2346_vm14, %v206_v34, 0.0  ;;  %v806_v34 = vrot.slane %v802_v29, %v2325_v23  ;;  %v1885_v33 = vld [vmem:[%s2747_s4 + $0x12] sm:$0x3] }
  0x79   :  { %v108_v38 = vpack.c.bf16 %v107_v35, %v107_v35  ;;  %v208_v39 = vpack.c.bf16 %v207_v37, %v207_v37  ;;  %v643_v37 = vsel %vm113_vm0, %v638_v17, 0 }
  0x7a   :  { %vm2507_vm6 = vcmp.eq.s32.totalorder %v806_v34, 1 }
  0x7b   :  { %v88_v42 = vpop.permute.xlu0 %87  ;;  %v115_v43 = vsel %vm113_vm0, %v108_v38, 0  ;;  %v259_v44 = vpop.permute.xlu1 %258  ;;  %v213_v49 = vsel %vm113_vm0, %v208_v39, 0 }
  0x7c   :  { %v95_v45 = vsel %vm2354_vm15, %v88_v42, 0.0  ;;  %1965 = vmatpush3.bf16.msra.mxu0 %v115_v43  ;;  %v266_v47 = vsel %vm2360_vm2, %v259_v44, 0.0  ;;  %v1855_v42 = vld [vmem:[%s2745_s2 + $0x24] sm:$0xf] }
  0x7d   :  { %v96_v48 = vpack.c.bf16 %v95_v45, %v95_v45  ;;  %v267_v50 = vpack.c.bf16 %v266_v47, %v266_v47  ;;  %1976 = vmatprep.subr.bf16.mxu0 %v2171_v2  ;;  %v918_v47 = vrot.slane %v914_v21, %v2325_v23  ;;  %v1892_v23 = vld [vmem:[%s2747_s4 + $0x18] sm:$0x3] }
  0x7f   :  { %1967 = vmatmul.mubr.msk.bf16.vlgmr.msra.gmra.mxu0 %vm109_vm9, %v1838_v46  ;;  %v161_v52 = vsel %vm113_vm0, %v96_v48, 0  ;;  %v318_v53 = vpop.permute.xlu0 %317  ;;  %v272_v57 = vsel %vm113_vm0, %v267_v50, 0  ;;  %v477_v0 = vpop.permute.xlu1 %476  ;;  %v1857_v48 = vld [vmem:[%s2745_s2 + $0x28] sm:$0xf]  ;;  %vm2533_vm7 = vcmp.eq.s32.totalorder %v918_v47, 1 }
  0x80   :  { %1971 = vmatpush3.bf16.msra.mxu1 %v161_v52  ;;  %1977 = vmatpush3.bf16.msra.mxu0 %v213_v49  ;;  %v325_v55 = vsel %vm2379_vm5, %v318_v53, 0.0  ;;  %v484_v7 = vsel %vm2411_vm13, %v477_v0, 0.0  ;;  %v1859_v53 = vld [vmem:[%s2745_s2 + $0x2c] sm:$0xf] }
  0x81   :  { %1978 = vmatprep.mubr.msk.bf16.mxu0 %vm2174_vm4, %v2171_v2  ;;  %v326_v58 = vpack.c.bf16 %v325_v55, %v325_v55  ;;  %1982 = vmatprep.subr.bf16.mxu1 %v2171_v2  ;;  %v485_v14 = vpack.c.bf16 %v484_v7, %v484_v7 }
  0x82   :  { %1988 = vmatprep.subr.bf16.mxu0 %v2171_v2 }
  0x83   :  { %1973 = vmatmul.mubr.msk.bf16.vlgmr.msra.gmra.mxu1 %vm109_vm9, %v86_v54  ;;  %v331_v62 = vsel %vm113_vm0, %v326_v58, 0  ;;  %v536_v10 = vpop.permute.xlu0 %535  ;;  %v490_v18 = vsel %vm113_vm0, %v485_v14, 0  ;;  %v689_v26 = vpop.permute.xlu1 %688 }
  0x84   :  { %1983 = vmatpush3.bf16.msra.mxu1 %v272_v57  ;;  %1984 = vmatprep.mubr.msk.bf16.mxu1 %vm2174_vm4, %v2171_v2  ;;  %v537_v15 = vsel %vm2379_vm5, %v536_v10, 0.0  ;;  %v690_v31 = vsel %vm2411_vm13, %v689_v26, 0.0  ;;  %v1861_v57 = vld [vmem:[%s2745_s2 + $0x30] sm:$0xf] }
  0x85   :  { %1994 = vmatprep.subr.bf16.mxu1 %v2171_v2  ;;  %v538_v20 = vpack.c.bf16 %v537_v15, %v537_v15  ;;  %v691_v35 = vpack.c.bf16 %v690_v31, %v690_v31 }
  0x87   :  { %1979 = vmatmul.mubr.msk.bf16.vlgmr.msra.gmra.mxu0 %vm109_vm9, %v1841_v60  ;;  %v543_v19 = vsel %vm113_vm0, %v538_v20, 0  ;;  %v742_v32 = vpop.permute.xlu0 %741  ;;  %v801_v39 = vpop.permute.xlu1 %800  ;;  %v696_v43 = vsel %vm113_vm0, %v691_v35, 0  ;;  %v1863_v60 = vld [vmem:[%s2745_s2 + $0x34] sm:$0xf] }
  0x88   :  { %1989 = vmatpush3.bf16.msra.mxu0 %v331_v62  ;;  %1990 = vmatprep.mubr.msk.bf16.mxu0 %vm2174_vm4, %v2171_v2  ;;  %v749_v38 = vsel %vm2490_vm1, %v742_v32, 0.0  ;;  %v808_v45 = vsel %vm2507_vm6, %v801_v39, 0.0  ;;  %v1865_v62 = vld [vmem:[%s2745_s2 + $0x38] sm:$0xf] }
  0x89   :  { %2000 = vmatprep.subr.bf16.mxu0 %v2171_v2  ;;  %v750_v44 = vpack.c.bf16 %v749_v38, %v749_v38  ;;  %v809_v49 = vpack.c.bf16 %v808_v45, %v808_v45 }
  0x8b   :  { %1985 = vmatmul.mubr.msk.bf16.vlgmr.msra.gmra.mxu1 %vm109_vm9, %v1843_v3  ;;  %v860_v46 = vpop.permute.xlu0 %859  ;;  %v755_v5 = vsel %vm113_vm0, %v750_v44, 0  ;;  %v913_v52 = vpop.permute.xlu1 %912  ;;  %v814_v54 = vsel %vm113_vm0, %v809_v49, 0 }
  0x8c   :  { %1995 = vmatpush3.bf16.msra.mxu1 %v381_v4  ;;  %1996 = vmatprep.mubr.msk.bf16.mxu1 %vm2174_vm4, %v2171_v2  ;;  %v861_v50 = vsel %vm2507_vm6, %v860_v46, 0.0  ;;  %v920_v56 = vsel %vm2533_vm7, %v913_v52, 0.0 }
  0x8d   :  { %2006 = vmatprep.subr.bf16.mxu1 %v2171_v2  ;;  %v862_v55 = vpack.c.bf16 %v861_v50, %v861_v50  ;;  %v921_v59 = vpack.c.bf16 %v920_v56, %v920_v56 }
  0x8f   :  { %1991 = vmatmul.mubr.msk.bf16.vlgmr.msra.gmra.mxu0 %vm109_vm9, %v1845_v13  ;;  %v867_v58 = vsel %vm113_vm0, %v862_v55, 0  ;;  %v926_v61 = vsel %vm113_vm0, %v921_v59, 0  ;;  %vm1017_vm0 = vcmask 1043456  }
  0x90   :  { %2001 = vmatpush3.bf16.msra.mxu0 %v431_v12  ;;  %2002 = vmatprep.mubr.msk.bf16.mxu0 %vm2174_vm4, %v2171_v2 }
  0x91   :  { %2012 = vmatprep.subr.bf16.mxu0 %v2171_v2 }
  0x93   :  { %1997 = vmatmul.mubr.msk.bf16.vlgmr.msra.gmra.mxu1 %vm109_vm9, %v1847_v16 }
  0x94   :  { %2007 = vmatpush3.bf16.msra.mxu1 %v490_v18  ;;  %2008 = vmatprep.mubr.msk.bf16.mxu1 %vm2174_vm4, %v2171_v2 }
  0x95   :  { %2018 = vmatprep.subr.bf16.mxu1 %v2171_v2 }
  0x97   :  { %2003 = vmatmul.mubr.msk.bf16.vlgmr.msra.gmra.mxu0 %vm109_vm9, %v1849_v22 }
  0x98   :  { %2013 = vmatpush3.bf16.msra.mxu0 %v543_v19  ;;  %2014 = vmatprep.mubr.msk.bf16.mxu0 %vm2174_vm4, %v2171_v2 }
  0x99   :  { %2024 = vmatprep.subr.bf16.mxu0 %v2171_v2 }
  0x9b   :  { %2009 = vmatmul.mubr.msk.bf16.vlgmr.msra.gmra.mxu1 %vm109_vm9, %v1851_v28 }
  0x9c   :  { %2019 = vmatpush3.bf16.msra.mxu1 %v593_v8  ;;  %2020 = vmatprep.mubr.msk.bf16.mxu1 %vm2174_vm4, %v2171_v2 }
  0x9d   :  { %2030 = vmatprep.subr.bf16.mxu1 %v2171_v2 }
  0x9f   :  { %2015 = vmatmul.mubr.msk.bf16.vlgmr.msra.gmra.mxu0 %vm109_vm9, %v1853_v9 }
  0xa0   :  { %2025 = vmatpush3.bf16.msra.mxu0 %v643_v37  ;;  %2026 = vmatprep.mubr.msk.bf16.mxu0 %vm2174_vm4, %v2171_v2 }
  0xa1   :  { %2036 = vmatprep.subr.bf16.mxu0 %v2171_v2 }
  0xa3   :  { %2021 = vmatmul.mubr.msk.bf16.vlgmr.msra.gmra.mxu1 %vm109_vm9, %v1855_v42 }
  0xa4   :  { %2031 = vmatpush3.bf16.msra.mxu1 %v696_v43  ;;  %2032 = vmatprep.mubr.msk.bf16.mxu1 %vm2174_vm4, %v2171_v2 }
  0xa5   :  { %2042 = vmatprep.subr.bf16.mxu1 %v2171_v2 }
  0xa7   :  { %2027 = vmatmul.mubr.msk.bf16.vlgmr.msra.gmra.mxu0 %vm109_vm9, %v1857_v48 }
  0xa8   :  { %2037 = vmatpush3.bf16.msra.mxu0 %v755_v5  ;;  %2038 = vmatprep.mubr.msk.bf16.mxu0 %vm2174_vm4, %v2171_v2 }
  0xa9   :  { %2048 = vmatprep.subr.bf16.mxu0 %v2171_v2 }
  0xab   :  { %2033 = vmatmul.mubr.msk.bf16.vlgmr.msra.gmra.mxu1 %vm109_vm9, %v1859_v53 }
  0xac   :  { %2043 = vmatpush3.bf16.msra.mxu1 %v814_v54  ;;  %2044 = vmatprep.mubr.msk.bf16.mxu1 %vm2174_vm4, %v2171_v2 }
  0xad   :  { %2054 = vmatprep.subr.bf16.mxu1 %v2171_v2 }
  0xaf   :  { %2039 = vmatmul.mubr.msk.bf16.vlgmr.msra.gmra.mxu0 %vm109_vm9, %v1861_v57 }
  0xb0   :  { %2049 = vmatpush3.bf16.msra.mxu0 %v867_v58  ;;  %2050 = vmatprep.mubr.msk.bf16.mxu0 %vm2174_vm4, %v2171_v2 }
  0xb1   :  { %2060 = vmatprep.subr.bf16.mxu0 %v2171_v2 }
  0xb3   :  { %2045 = vmatmul.mubr.msk.bf16.vlgmr.msra.gmra.mxu1 %vm109_vm9, %v1863_v60 }
  0xb4   :  { %2055 = vmatpush3.bf16.msra.mxu1 %v926_v61  ;;  %2056 = vmatprep.mubr.msk.bf16.mxu1 %vm2174_vm4, %v2171_v2 }
  0xb5   :  { %2066 = vmatprep.subr.bf16.mxu1 %v2171_v2 }
  0xb7   :  { %2051 = vmatmul.mubr.msk.bf16.vlgmr.msra.gmra.mxu0 %vm109_vm9, %v1865_v62 }
  0xb8   :  { %2062 = vmatprep.mubr.msk.bf16.mxu0 %vm2174_vm4, %v2171_v2 }
  0xbb   :  { %2057 = vmatmul.mubr.msk.bf16.vlgmr.msra.gmra.mxu1 %vm109_vm9, %v1867_v63  ;;  %vm1013_vm9 = vcmask 64512  }
  0xbc   :  { %2068 = vmatprep.mubr.msk.bf16.mxu1 %vm2174_vm4, %v2171_v2 }
 0x13f   :  { %v151_v0 = vpop.f32.mrf.mxu0 }
 0x141   :  { %v1968_v3 = vpop.f32.mrf.mxu0 }
 0x143   :  { %v154_v4 = vpop.f32.mrf.mxu0  ;;  %v197_v6 = vpop.f32.mrf.mxu1 }
 0x144   :  { %v198_v42 = vadd.f32 %v197_v6, %v151_v0 }
 0x145   :  { %v1969_v7 = vpop.f32.mrf.mxu0  ;;  %v1974_v10 = vpop.f32.mrf.mxu1 }
 0x147   :  { %v200_v11 = vpop.f32.mrf.mxu1  ;;  %v249_v13 = vpop.f32.mrf.mxu0 }
 0x148   :  { %v255_v44 = vadd.f32 %v249_v13, %v198_v42 }
 0x149   :  { %v1975_v14 = vpop.f32.mrf.mxu1  ;;  %v1980_v12 = vpop.f32.mrf.mxu0 }
 0x14b   :  { %v252_v15 = vpop.f32.mrf.mxu0  ;;  %v308_v16 = vpop.f32.mrf.mxu1 }
 0x14c   :  { %v314_v47 = vadd.f32 %v308_v16, %v255_v44 }
 0x14d   :  { %v1981_v18 = vpop.f32.mrf.mxu0  ;;  %v1986_v20 = vpop.f32.mrf.mxu1 }
 0x14f   :  { %v311_v22 = vpop.f32.mrf.mxu1  ;;  %v367_v24 = vpop.f32.mrf.mxu0 }
 0x150   :  { %v373_v49 = vadd.f32 %v367_v24, %v314_v47 }
 0x151   :  { %v1987_v19 = vpop.f32.mrf.mxu1  ;;  %v1992_v25 = vpop.f32.mrf.mxu0 }
 0x152   :  { %v973_v25 = vpop.permute.xlu0 %972 }
 0x153   :  { %v370_v26 = vpop.f32.mrf.mxu0  ;;  %v417_v27 = vpop.f32.mrf.mxu1 }
 0x154   :  { %v423_v53 = vadd.f32 %v417_v27, %v373_v49  ;;  %v1010_v49 = vld [vmem:[%s2747_s4] sm:$0x3] }
 0x155   :  { %v1993_v28 = vpop.f32.mrf.mxu0  ;;  %v1998_v29 = vpop.f32.mrf.mxu1 }
 0x157   :  { %v420_v8 = vpop.f32.mrf.mxu1  ;;  %v467_v17 = vpop.f32.mrf.mxu0 }
 0x158   :  { %v473_v56 = vadd.f32 %v467_v17, %v423_v53 }
 0x159   :  { %v1999_v31 = vpop.f32.mrf.mxu1  ;;  %v2004_v32 = vpop.f32.mrf.mxu0 }
 0x15b   :  { %v470_v34 = vpop.f32.mrf.mxu0  ;;  %v526_v9 = vpop.f32.mrf.mxu1 }
 0x15c   :  { %v532_v59 = vadd.f32 %v526_v9, %v473_v56  ;;  %v1205_v9 = vld [vmem:[%s2746_s5] sm:$0xf] }
 0x15d   :  { %v2005_v35 = vpop.f32.mrf.mxu0  ;;  %v2010_v37 = vpop.f32.mrf.mxu1 }
 0x15f   :  { %v529_v38 = vpop.f32.mrf.mxu1  ;;  %v579_v39 = vpop.f32.mrf.mxu0 }
 0x160   :  { %v585_v62 = vadd.f32 %v579_v39, %v532_v59 }
 0x161   :  { %v2011_v21 = vpop.f32.mrf.mxu1  ;;  %v2016_v43 = vpop.f32.mrf.mxu0 }
 0x163   :  { %v582_v45 = vpop.f32.mrf.mxu0  ;;  %v629_v46 = vpop.f32.mrf.mxu1 }
 0x164   :  { %v635_v3 = vadd.f32 %v629_v46, %v585_v62  ;;  %v1869_v46 = vld [vmem:[%s2747_s4 + $0x2] sm:$0x3] }
 0x165   :  { %v2017_v48 = vpop.f32.mrf.mxu0  ;;  %v2022_v5 = vpop.f32.mrf.mxu1 }
 0x167   :  { %v632_v50 = vpop.f32.mrf.mxu1  ;;  %v679_v52 = vpop.f32.mrf.mxu0 }
 0x168   :  { %v685_v7 = vadd.f32 %v679_v52, %v635_v3 }
 0x169   :  { %v2023_v54 = vpop.f32.mrf.mxu1  ;;  %v2028_v55 = vpop.f32.mrf.mxu0 }
 0x16a   :  { %v1874_v54 = vld [vmem:[%s2747_s4 + $0x6] sm:$0x3] }
 0x16b   :  { %v682_v57 = vpop.f32.mrf.mxu0  ;;  %v732_v58 = vpop.f32.mrf.mxu1 }
 0x16c   :  { %v738_v13 = vadd.f32 %v732_v58, %v685_v7  ;;  %v1877_v57 = vld [vmem:[%s2747_s4 + $0xa] sm:$0x3] }
 0x16d   :  { %v2029_v60 = vpop.f32.mrf.mxu0  ;;  %v2034_v61 = vpop.f32.mrf.mxu1 }
 0x16e   :  { %v1880_v60 = vld [vmem:[%s2747_s4 + $0xc] sm:$0x3] }
 0x16f   :  { %v735_v63 = vpop.f32.mrf.mxu1  ;;  %v791_v0 = vpop.f32.mrf.mxu0 }
 0x170   :  { %v797_v15 = vadd.f32 %v791_v0, %v738_v13  ;;  %v1882_v63 = vld [vmem:[%s2747_s4 + $0xe] sm:$0x3]  ;;  %v1890_v13 = vld [vmem:[%s2747_s4 + $0x16] sm:$0x3] }
 0x171   :  { %v2035_v4 = vpop.f32.mrf.mxu1  ;;  %v2040_v6 = vpop.f32.mrf.mxu0 }
 0x173   :  { %v794_v10 = vpop.f32.mrf.mxu0  ;;  %v850_v11 = vpop.f32.mrf.mxu1 }
 0x174   :  { %v856_v20 = vadd.f32 %v850_v11, %v797_v15  ;;  %v1888_v11 = vld [vmem:[%s2747_s4 + $0x14] sm:$0x3]  ;;  %v1893_v15 = vld [vmem:[%s2747_s4 + $0x1a] sm:$0x3] }
 0x175   :  { %v2041_v14 = vpop.f32.mrf.mxu0  ;;  %v2046_v12 = vpop.f32.mrf.mxu1 }
 0x177   :  { %v853_v16 = vpop.f32.mrf.mxu1  ;;  %v903_v18 = vpop.f32.mrf.mxu0 }
 0x178   :  { %v909_v19 = vadd.f32 %v903_v18, %v856_v20  ;;  %v1896_v20 = vld [vmem:[%s2747_s4 + $0x1c] sm:$0x3] }
 0x179   :  { %v2047_v22 = vpop.f32.mrf.mxu1  ;;  %v2052_v24 = vpop.f32.mrf.mxu0 }
 0x17a   :  { %v1898_v22 = vld [vmem:[%s2747_s4 + $0x1e] sm:$0x3] }
 0x17b   :  { %v906_v26 = vpop.f32.mrf.mxu0  ;;  %v962_v27 = vpop.f32.mrf.mxu1 }
 0x17c   :  { %v968_v28 = vadd.f32 %v962_v27, %v909_v19 }
 0x17d   :  { %v2053_v29 = vpop.f32.mrf.mxu0  ;;  %v2058_v8 = vpop.f32.mrf.mxu1 }
 0x17e   :  { %v975_v17 = vadd.f32 %v973_v25, %v968_v28 }
 0x17f   :  { %v965_v31 = vpop.f32.mrf.mxu1 }
 0x180   :  { %v976_v32 = vmax.f32 %v975_v17, 0.0 }
 0x181   :  { %v2059_v34 = vpop.f32.mrf.mxu1 }
 0x182   :  { %989 = vrot.lane.b32.xlu0 %v976_v32, %s2177_s15  ;;  %981 = vrot.lane.b32.xlu1 %v976_v32, %s2173_s13  ;;  %v993_v5 = vpack.c.bf16 %v976_v32, %v976_v32 }
 0x184   :  { %v2614_v52 = vsel %vm1017_vm0, %v993_v5, 0 }
 0x186   :  { %994 = vrot.lane.b32.xlu0 %v976_v32, %s2178_s16  ;;  %977 = vrot.lane.b32.xlu1 %v976_v32, %s2175_s1 }
 0x18a   :  { %1002 = vrot.lane.b32.xlu0 %v976_v32, %s2180_s18  ;;  %985 = vrot.lane.b32.xlu1 %v976_v32, %s2176_s14 }
 0x18e   :  { %1208 = vperm.xlu0 %2167, %v1205_v9   ;;  %998 = vrot.lane.b32.xlu1 %v976_v32, %s2179_s17 }
 0x192   :  { %1006 = vrot.lane.b32.xlu1 %v976_v32, %s2181_s19 }
 0x1f4   :  { %v990_v35 = vpop.permute.xlu0 %989  ;;  %v982_v37 = vpop.permute.xlu1 %981 }
 0x1f5   :  { %v991_v38 = vsel %vm2379_vm5, %v990_v35, 0.0  ;;  %v983_v39 = vsel %vm2346_vm14, %v982_v37, 0.0 }
 0x1f6   :  { %v984_v42 = vpack.c.bf16 %v983_v39, %v983_v39  ;;  %v992_v21 = vpack.c.bf16 %v991_v38, %v991_v38 }
 0x1f8   :  { %v1019_v43 = vsel %vm1017_vm0, %v984_v42, 0  ;;  %v978_v44 = vpop.permute.xlu1 %977  ;;  %v1113_v30 = vsel %vm1017_vm0, %v992_v21, 0  ;;  %v995_v55 = vpop.permute.xlu0 %994 }
 0x1f9   :  { %v979_v45 = vsel %vm2354_vm15, %v978_v44, 0.0  ;;  %2061 = vmatpush3.bf16.msra.mxu0 %v1019_v43  ;;  %v996_v56 = vsel %vm2411_vm13, %v995_v55, 0.0 }
 0x1fa   :  { %v980_v51 = vpack.c.bf16 %v979_v45, %v979_v45  ;;  %2072 = vmatprep.subr.bf16.mxu0 %v2171_v2  ;;  %v997_v58 = vpack.c.bf16 %v996_v56, %v996_v56 }
 0x1fc   :  { %v1065_v47 = vsel %vm1017_vm0, %v980_v51, 0  ;;  %2063 = vmatmul.mubr.msk.bf16.vlgmr.msra.gmra.mxu0 %vm1013_vm9, %v1869_v46  ;;  %v986_v48 = vpop.permute.xlu1 %985  ;;  %v1357_v59 = vsel %vm1017_vm0, %v997_v58, 0  ;;  %v1003_v0 = vpop.permute.xlu0 %1002 }
 0x1fd   :  { %v987_v36 = vsel %vm2360_vm2, %v986_v48, 0.0  ;;  %2067 = vmatpush3.bf16.msra.mxu1 %v1065_v47  ;;  %2073 = vmatpush3.bf16.msra.mxu0 %v1113_v30  ;;  %v1004_v4 = vsel %vm2507_vm6, %v1003_v0, 0.0 }
 0x1fe   :  { %2078 = vmatprep.subr.bf16.mxu1 %v2171_v2  ;;  %2074 = vmatprep.mubr.msk.bf16.mxu0 %vm2174_vm4, %v2171_v2  ;;  %v988_v50 = vpack.c.bf16 %v987_v36, %v987_v36  ;;  %v1005_v6 = vpack.c.bf16 %v1004_v4, %v1004_v4 }
 0x1ff   :  { %2084 = vmatprep.subr.bf16.mxu0 %v2171_v2 }
 0x200   :  { %2069 = vmatmul.mubr.msk.bf16.vlgmr.msra.gmra.mxu1 %vm1013_vm9, %v1010_v49  ;;  %v1220_v53 = vsel %vm1017_vm0, %v988_v50, 0  ;;  %v999_v61 = vpop.permute.xlu1 %998  ;;  %v1546_v10 = vsel %vm1017_vm0, %v1005_v6, 0 }
 0x201   :  { %2079 = vmatpush3.bf16.msra.mxu1 %v2614_v52  ;;  %2080 = vmatprep.mubr.msk.bf16.mxu1 %vm2174_vm4, %v2171_v2  ;;  %v1000_v62 = vsel %vm2490_vm1, %v999_v61, 0.0 }
 0x202   :  { %2090 = vmatprep.subr.bf16.mxu1 %v2171_v2  ;;  %v1001_v3 = vpack.c.bf16 %v1000_v62, %v1000_v62 }
 0x204   :  { %2075 = vmatmul.mubr.msk.bf16.vlgmr.msra.gmra.mxu0 %vm1013_vm9, %v1872_v40  ;;  %v1497_v7 = vsel %vm1017_vm0, %v1001_v3, 0  ;;  %v1007_v14 = vpop.permute.xlu1 %1006 }
 0x205   :  { %2085 = vmatpush3.bf16.msra.mxu0 %v1220_v53  ;;  %2086 = vmatprep.mubr.msk.bf16.mxu0 %vm2174_vm4, %v2171_v2  ;;  %v1008_v12 = vsel %vm2533_vm7, %v1007_v14, 0.0 }
 0x206   :  { %2096 = vmatprep.subr.bf16.mxu0 %v2171_v2  ;;  %v1009_v16 = vpack.c.bf16 %v1008_v12, %v1008_v12 }
 0x208   :  { %2081 = vmatmul.mubr.msk.bf16.vlgmr.msra.gmra.mxu1 %vm1013_vm9, %v1874_v54  ;;  %v1732_v18 = vsel %vm1017_vm0, %v1009_v16, 0 }
 0x209   :  { %2091 = vmatpush3.bf16.msra.mxu1 %v1019_v43  ;;  %2092 = vmatprep.mubr.msk.bf16.mxu1 %vm2174_vm4, %v2171_v2 }
 0x20a   :  { %2102 = vmatprep.subr.bf16.mxu1 %v2171_v2 }
 0x20c   :  { %2087 = vmatmul.mubr.msk.bf16.vlgmr.msra.gmra.mxu0 %vm1013_vm9, %v1877_v57 }
 0x20d   :  { %2097 = vmatpush3.bf16.msra.mxu0 %v2614_v52  ;;  %2098 = vmatprep.mubr.msk.bf16.mxu0 %vm2174_vm4, %v2171_v2 }
 0x20e   :  { %2108 = vmatprep.subr.bf16.mxu0 %v2171_v2 }
 0x210   :  { %2093 = vmatmul.mubr.msk.bf16.vlgmr.msra.gmra.mxu1 %vm1013_vm9, %v1876_v1 }
 0x211   :  { %2103 = vmatpush3.bf16.msra.mxu1 %v1357_v59  ;;  %2104 = vmatprep.mubr.msk.bf16.mxu1 %vm2174_vm4, %v2171_v2 }
 0x212   :  { %2114 = vmatprep.subr.bf16.mxu1 %v2171_v2 }
 0x214   :  { %2099 = vmatmul.mubr.msk.bf16.vlgmr.msra.gmra.mxu0 %vm1013_vm9, %v1880_v60 }
 0x215   :  { %2109 = vmatpush3.bf16.msra.mxu0 %v2614_v52  ;;  %2110 = vmatprep.mubr.msk.bf16.mxu0 %vm2174_vm4, %v2171_v2 }
 0x216   :  { %2120 = vmatprep.subr.bf16.mxu0 %v2171_v2 }
 0x218   :  { %2105 = vmatmul.mubr.msk.bf16.vlgmr.msra.gmra.mxu1 %vm1013_vm9, %v1882_v63 }
 0x219   :  { %2115 = vmatpush3.bf16.msra.mxu1 %v1113_v30  ;;  %2116 = vmatprep.mubr.msk.bf16.mxu1 %vm2174_vm4, %v2171_v2 }
 0x21a   :  { %2126 = vmatprep.subr.bf16.mxu1 %v2171_v2 }
 0x21c   :  { %2111 = vmatmul.mubr.msk.bf16.vlgmr.msra.gmra.mxu0 %vm1013_vm9, %v1885_v33 }
 0x21d   :  { %2121 = vmatpush3.bf16.msra.mxu0 %v1497_v7  ;;  %2122 = vmatprep.mubr.msk.bf16.mxu0 %vm2174_vm4, %v2171_v2 }
 0x21e   :  { %2132 = vmatprep.subr.bf16.mxu0 %v2171_v2 }
 0x220   :  { %2117 = vmatmul.mubr.msk.bf16.vlgmr.msra.gmra.mxu1 %vm1013_vm9, %v1884_v41 }
 0x221   :  { %2127 = vmatpush3.bf16.msra.mxu1 %v1546_v10  ;;  %2128 = vmatprep.mubr.msk.bf16.mxu1 %vm2174_vm4, %v2171_v2 }
 0x222   :  { %2138 = vmatprep.subr.bf16.mxu1 %v2171_v2 }
 0x224   :  { %2123 = vmatmul.mubr.msk.bf16.vlgmr.msra.gmra.mxu0 %vm1013_vm9, %v1888_v11 }
 0x225   :  { %2133 = vmatpush3.bf16.msra.mxu0 %v1357_v59  ;;  %2134 = vmatprep.mubr.msk.bf16.mxu0 %vm2174_vm4, %v2171_v2 }
 0x226   :  { %2144 = vmatprep.subr.bf16.mxu0 %v2171_v2 }
 0x228   :  { %2129 = vmatmul.mubr.msk.bf16.vlgmr.msra.gmra.mxu1 %vm1013_vm9, %v1890_v13 }
 0x229   :  { %2139 = vmatpush3.bf16.msra.mxu1 %v2614_v52  ;;  %2140 = vmatprep.mubr.msk.bf16.mxu1 %vm2174_vm4, %v2171_v2 }
 0x22a   :  { %2150 = vmatprep.subr.bf16.mxu1 %v2171_v2 }
 0x22c   :  { %2135 = vmatmul.mubr.msk.bf16.vlgmr.msra.gmra.mxu0 %vm1013_vm9, %v1893_v15 }
 0x22d   :  { %2145 = vmatpush3.bf16.msra.mxu0 %v1546_v10  ;;  %2146 = vmatprep.mubr.msk.bf16.mxu0 %vm2174_vm4, %v2171_v2 }
 0x230   :  { %2141 = vmatmul.mubr.msk.bf16.vlgmr.msra.gmra.mxu1 %vm1013_vm9, %v1892_v23 }
 0x231   :  { %2151 = vmatpush3.bf16.msra.mxu1 %v1732_v18  ;;  %2152 = vmatprep.mubr.msk.bf16.mxu1 %vm2174_vm4, %v2171_v2  ;;  %v1209_v18 = vpop.permute.xlu0 %1208 }
 0x234   :  { %2147 = vmatmul.mubr.msk.bf16.vlgmr.msra.gmra.mxu0 %vm1013_vm9, %v1896_v20 }
 0x238   :  { %2153 = vmatmul.mubr.msk.bf16.vlgmr.msra.gmra.mxu1 %vm1013_vm9, %v1898_v22 }
 0x2bc   :  { %v1055_v24 = vpop.f32.mrf.mxu0 }
 0x2be   :  { %v2064_v19 = vpop.f32.mrf.mxu0 }
 0x2c0   :  { %v1101_v25 = vpop.f32.mrf.mxu1  ;;  %v1058_v26 = vpop.f32.mrf.mxu0 }
 0x2c1   :  { %v1102_v7 = vadd.f32 %v1101_v25, %v1055_v24 }
 0x2c2   :  { %v2070_v27 = vpop.f32.mrf.mxu1  ;;  %v2065_v28 = vpop.f32.mrf.mxu0 }
 0x2c4   :  { %v1104_v29 = vpop.f32.mrf.mxu1  ;;  %v1149_v8 = vpop.f32.mrf.mxu0 }
 0x2c5   :  { %v1155_v14 = vadd.f32 %v1149_v8, %v1102_v7 }
 0x2c6   :  { %v2071_v17 = vpop.f32.mrf.mxu1  ;;  %v2076_v31 = vpop.f32.mrf.mxu0 }
 0x2c8   :  { %v1198_v32 = vpop.f32.mrf.mxu1  ;;  %v1152_v2 = vpop.f32.mrf.mxu0 }
 0x2c9   :  { %v1204_v20 = vadd.f32 %v1198_v32, %v1155_v14 }
 0x2ca   :  { %v2082_v34 = vpop.f32.mrf.mxu1  ;;  %v2077_v9 = vpop.f32.mrf.mxu0 }
 0x2cb   :  { %v1211_v31 = vadd.f32 %v1209_v18, %v1204_v20 }
 0x2cc   :  { %v1201_v35 = vpop.f32.mrf.mxu1  ;;  %v1256_v37 = vpop.f32.mrf.mxu0 }
 0x2ce   :  { %v2083_v38 = vpop.f32.mrf.mxu1  ;;  %v2088_v39 = vpop.f32.mrf.mxu0 }
 0x2d0   :  { %v1299_v42 = vpop.f32.mrf.mxu1  ;;  %v1259_v21 = vpop.f32.mrf.mxu0 }
 0x2d1   :  { %v1300_v4 = vadd.f32 %v1299_v42, %v1256_v37 }
 0x2d2   :  { %v2094_v43 = vpop.f32.mrf.mxu1  ;;  %v2089_v44 = vpop.f32.mrf.mxu0 }
 0x2d4   :  { %v1302_v45 = vpop.f32.mrf.mxu1  ;;  %v1344_v46 = vpop.f32.mrf.mxu0 }
 0x2d5   :  { %v1350_v41 = vadd.f32 %v1344_v46, %v1300_v4 }
 0x2d6   :  { %v2095_v51 = vpop.f32.mrf.mxu1  ;;  %v2100_v30 = vpop.f32.mrf.mxu0 }
 0x2d8   :  { %v1393_v47 = vpop.f32.mrf.mxu1  ;;  %v1347_v48 = vpop.f32.mrf.mxu0 }
 0x2d9   :  { %v1399_v12 = vadd.f32 %v1393_v47, %v1350_v41 }
 0x2da   :  { %v2106_v5 = vpop.f32.mrf.mxu1  ;;  %v2101_v36 = vpop.f32.mrf.mxu0 }
 0x2db   :  { %v1400_v27 = vadd.f32 %v1399_v12, %v1209_v18 }
 0x2dc   :  { %v1396_v49 = vpop.f32.mrf.mxu1  ;;  %v1442_v50 = vpop.f32.mrf.mxu0 }
 0x2dd   :  { %v1776_v9 = vadd.f32 %v1400_v27, %v1211_v31 }
 0x2de   :  { %v2107_v52 = vpop.f32.mrf.mxu1  ;;  %v2112_v40 = vpop.f32.mrf.mxu0 }
 0x2e0   :  { %v1485_v53 = vpop.f32.mrf.mxu1  ;;  %v1445_v54 = vpop.f32.mrf.mxu0 }
 0x2e1   :  { %v1486_v10 = vadd.f32 %v1485_v53, %v1442_v50  ;;  %v1808_v54 = vld [vmem:[%s2748_s7] sm:$0xf] }
 0x2e2   :  { %v2118_v55 = vpop.f32.mrf.mxu1  ;;  %v2113_v56 = vpop.f32.mrf.mxu0 }
 0x2e4   :  { %v1488_v57 = vpop.f32.mrf.mxu1  ;;  %v1533_v58 = vpop.f32.mrf.mxu0 }
 0x2e5   :  { %v1539_v15 = vadd.f32 %v1533_v58, %v1486_v10  ;;  %v1798_v58 = vld [vmem:[%s2749_s6] sm:$0xf] }
 0x2e6   :  { %v2119_v1 = vpop.f32.mrf.mxu1  ;;  %v2124_v59 = vpop.f32.mrf.mxu0 }
 0x2e8   :  { %v1582_v60 = vpop.f32.mrf.mxu1  ;;  %v1536_v61 = vpop.f32.mrf.mxu0 }
 0x2e9   :  { %v1588_v22 = vadd.f32 %v1582_v60, %v1539_v15 }
 0x2ea   :  { %v2130_v62 = vpop.f32.mrf.mxu1  ;;  %v2125_v63 = vpop.f32.mrf.mxu0 }
 0x2eb   :  { %v1589_v24 = vadd.f32 %v1588_v22, %v1209_v18 }
 0x2ec   :  { %v1585_v0 = vpop.f32.mrf.mxu1  ;;  %v1631_v3 = vpop.f32.mrf.mxu0 }
 0x2ed   :  { %v1777_v39 = vadd.f32 %v1776_v9, %v1589_v24 }
 0x2ee   :  { %v2131_v33 = vpop.f32.mrf.mxu1  ;;  %v2136_v6 = vpop.f32.mrf.mxu0 }
 0x2f0   :  { %v1674_v11 = vpop.f32.mrf.mxu1  ;;  %v1634_v13 = vpop.f32.mrf.mxu0 }
 0x2f1   :  { %v1675_v28 = vadd.f32 %v1674_v11, %v1631_v3 }
 0x2f2   :  { %v2142_v16 = vpop.f32.mrf.mxu1  ;;  %v2137_v23 = vpop.f32.mrf.mxu0 }
 0x2f4   :  { %v1677_v19 = vpop.f32.mrf.mxu1  ;;  %v1719_v26 = vpop.f32.mrf.mxu0 }
 0x2f5   :  { %v1725_v25 = vadd.f32 %v1719_v26, %v1675_v28 }
 0x2f6   :  { %v2143_v29 = vpop.f32.mrf.mxu1  ;;  %v2148_v17 = vpop.f32.mrf.mxu0 }
 0x2f8   :  { %v1768_v2 = vpop.f32.mrf.mxu1  ;;  %v1722_v34 = vpop.f32.mrf.mxu0 }
 0x2f9   :  { %v1774_v8 = vadd.f32 %v1768_v2, %v1725_v25 }
 0x2fa   :  { %v2154_v35 = vpop.f32.mrf.mxu1  ;;  %v2149_v37 = vpop.f32.mrf.mxu0 }
 0x2fb   :  { %v1775_v38 = vadd.f32 %v1774_v8, %v1209_v18 }
 0x2fc   :  { %v1771_v42 = vpop.f32.mrf.mxu1 }
 0x2fd   :  { %v1778_v32 = vadd.f32 %v1777_v39, %v1775_v38 }
 0x2fe   :  { %v2155_v21 = vpop.f32.mrf.mxu1 }
 0x2ff   :  { %v1779_v43 = vsel %vm1017_vm0, %v1778_v32, 0.0 }
 0x300   :  { %1780 = vadd.xlane.f32.xlu1 %v1779_v43 }
 0x311   :  { %1811 = vperm.xlu1 %2168, %v1808_v54  }
 0x389   :  { %v1781_v44 = vpop.xlane.xlu1 %1780 }
 0x38a   :  { %v1782_v45 = vmul.f32 0.001953125, %v1781_v44 }
 0x38c   :  { %v1783_v46 = vsub.f32 %v1211_v31, %v1782_v45  ;;  %v1784_v51 = vsub.f32 %v1400_v27, %v1782_v45  ;;  %v1785_v30 = vsub.f32 %v1589_v24, %v1782_v45  ;;  %v1786_v47 = vsub.f32 %v1775_v38, %v1782_v45 }
 0x38d   :  { %v1812_v61 = vpop.permute.xlu1 %1811 }
 0x38e   :  { %v1787_v48 = vmul.f32 %v1783_v46, %v1783_v46  ;;  %v1788_v5 = vmul.f32 %v1784_v51, %v1784_v51  ;;  %v1790_v49 = vmul.f32 %v1785_v30, %v1785_v30  ;;  %v1792_v52 = vmul.f32 %v1786_v47, %v1786_v47 }
 0x390   :  { %v1789_v36 = vadd.f32 %v1788_v5, %v1787_v48 }
 0x392   :  { %v1791_v50 = vadd.f32 %v1790_v49, %v1789_v36 }
 0x394   :  { %v1793_v40 = vadd.f32 %v1792_v52, %v1791_v50 }
 0x396   :  { %v1794_v53 = vsel %vm1017_vm0, %v1793_v40, 0.0 }
 0x397   :  { %1795 = vadd.xlane.f32.xlu0 %v1794_v53 }
 0x420   :  { %v1796_v55 = vpop.xlane.xlu0 %1795 }
 0x421   :  { %v1797_v56 = vmul.f32 0.001953125, %v1796_v55 }
 0x423   :  { %v1799_v57 = vadd.f32 1e-05, %v1797_v56 }
 0x425   :  { %2169 = vrsqrt.f32 %v1799_v57 }
 0x432   :  { %v2170_v1 = vpop.eup %2169 }
 0x433   :  { %v1801_v59 = vmul.f32 %v2170_v1, %v1798_v58 }
 0x435   :  { %1804 = vperm.xlu0 %2167, %v1801_v59  }
 0x4b0   :  { %v1805_v60 = vpop.permute.xlu0 %1804 }
 0x4b1   :  { %v1807_v62 = vmul.f32 %v1805_v60, %v1783_v46  ;;  %v1815_v63 = vmul.f32 %v1805_v60, %v1784_v51  ;;  %v1817_v0 = vmul.f32 %v1805_v60, %v1785_v30  ;;  %v1819_v3 = vmul.f32 %v1805_v60, %v1786_v47 }
 0x4b3   :  { %v1816_v4 = vadd.f32 %v1815_v63, %v1812_v61  ;;  %v1820_v33 = vadd.f32 %v1819_v3, %v1812_v61  ;;  %v1814_v6 = vadd.f32 %v1812_v61, %v1807_v62  ;;  %v1818_v7 = vadd.f32 %v1817_v0, %v1812_v61 }
 0x4b5   :  { %v1822_v41 = vrot.slane %v1816_v4, 4  ;;  %v1825_v10 = vrot.slane %v1820_v33, 4 }
 0x4b7   :  { %v1827_v11 = vsel %vm1017_vm0, %v1814_v6, %v1822_v41  ;;  %v1828_v13 = vsel %vm1017_vm0, %v1818_v7, %v1825_v10 }
 0x4b8   :  { %1829 = vst [vmem:[%s2750_s8] sm:$0xff] %v1827_v11  ;;  %1830 = vst [vmem:[%s2750_s8 + $0x8] sm:$0xff] %v1828_v13 }

</bundles_post_ra>
